<compile_context>
chip_gen: v7x
topology: tpu7x:2x2x1
jax: 0.10.0
libtpu: 0.0.40
codegen_flags: <defaults>
</compile_context>

<pallas_src>
import functools
import math

import jax
import jax.numpy as jnp
from jax.experimental import pallas as pl
from jax.experimental.pallas import tpu as pltpu


# ---------------------------------------------------------------------------
# Exact-style GELU inside the kernel.
# TODO(synk): switch to lax.erf once its Mosaic TPU lowering is guaranteed;
# until then use the Abramowitz&Stegun 7.1.26 rational erf (|err| <= 1.5e-7,
# i.e. at f32-epsilon level), built only from exp/abs/where which lower cleanly.
# ---------------------------------------------------------------------------
def _erf_approx(x):
    a1, a2, a3, a4, a5 = (0.254829592, -0.284496736, 1.421413741,
                          -1.453152027, 1.061405429)
    p = 0.3275911
    ax = jnp.abs(x)
    t = 1.0 / (1.0 + p * ax)
    poly = ((((a5 * t + a4) * t + a3) * t + a2) * t + a1) * t
    y = 1.0 - poly * jnp.exp(-ax * ax)
    return jnp.where(x < 0.0, -y, y)


def _gelu_exact(x):
    return 0.5 * x * (1.0 + _erf_approx(x * (1.0 / math.sqrt(2.0))))


# ---------------------------------------------------------------------------
# Fused per-layer Pallas kernel:
#   multi-hop message passing + aggregator + output projection + GELU.
# Refs (per grid step, Bt graphs):
#   z0_ref : (Bt, N, h+1)      [X*start_attn | start_attn]  (denominator folded)
#   at_ref : (Bt, 2, GN, GN)   [block-diag(A)*uni_attn ; kron(trans_attn^T, I_N)]
#   ea_ref : (Bt, N, 1)        end_attn
#   sp_ref : (Bt, 1, h)        W_q @ S (aggregator query)
#   w_ref  : (k, GN+1, h+1)    rows 0..GN-1: diag W[t] per head (ones in col h),
#                              row GN: W_pad[t] (ones in col h)
#   h_ref  : (Bt, N, d_in)     layer input H
#   wc_ref : (d_in+h, d_out)   [Vh^T ; Vz^T]
#   bc_ref : (1, d_out)        bh + bz
#   o_ref  : (Bt, N, d_out)    GELU(Vh(H) + Vz(Z))
# ---------------------------------------------------------------------------
def _layer_kernel(z0_ref, at_ref, ea_ref, sp_ref, w_ref, h_ref, wc_ref, bc_ref,
                  o_ref, *, k, n_head, n_node, eps, temperature):
    bt = z0_ref.shape[0]
    gn = n_head * n_node
    d1 = z0_ref.shape[-1]            # hidden + 1 (last column = denominator)
    h = d1 - 1

    A_ua = at_ref[:, 0, :, :]        # (Bt, GN, GN)
    T = at_ref[:, 1, :, :]           # (Bt, GN, GN)
    ea = ea_ref[...]                 # (Bt, N, 1)
    sp = sp_ref[...]                 # (Bt, 1, h)

    # Replicate the augmented start state over heads -> (Bt, GN, h+1).
    z0 = z0_ref[...]
    Zh = jnp.concatenate([z0] * n_head, axis=1)

    z_all = []
    for t in range(k):
        if t > 0:
            # head-transition mixing: one matmul by kron(trans_attn^T, I_N)
            Zh = jnp.einsum('bMN,bNd->bMd', T, Zh,
                            preferred_element_type=jnp.float32)
        Zh = Zh * w_ref[t, :gn, :]                       # diag W[t] (col h == 1)
        Zh = jnp.einsum('bMN,bNd->bMd', A_ua, Zh,        # A @ (uni_attn * Z), all heads
                        preferred_element_type=jnp.float32)
        # sum over heads (static sublane-aligned slices, no reshape relayout)
        zsum = Zh[:, 0:n_node, :]
        for g in range(1, n_head):
            zsum = zsum + Zh[:, g * n_node:(g + 1) * n_node, :]
        zt = zsum * w_ref[t, gn:gn + 1, :] * ea          # W_pad[t] (col h == 1) * end_attn
        # split numerator / folded denominator and normalize
        z_all.append(zt[..., :h] *
                     pl.reciprocal(zt[..., h:] + eps, approx=True))

    # ---------------- Aggregator: softmax over the k hops ----------------
    scores = jnp.concatenate(
        [jnp.sum(z * sp, axis=-1, keepdims=True) for z in z_all], axis=-1)
    scores = scores * (1.0 / temperature)                # (Bt, N, k)
    m = jnp.max(scores, axis=-1, keepdims=True)
    e = jnp.exp(scores - m)
    attn = e * pl.reciprocal(jnp.sum(e, axis=-1, keepdims=True), approx=True)
    z_agg = attn[..., 0:1] * z_all[0]
    for t in range(1, k):
        z_agg = z_agg + attn[..., t:t + 1] * z_all[t]    # (Bt, N, h)

    # ---------- fused output projection + GELU: GELU([H|Z] @ [Vh^T;Vz^T] + b) ----------
    hz = jnp.concatenate([h_ref[...], z_agg], axis=-1)   # (Bt, N, d_in + h)
    d_cat = hz.shape[-1]
    y = jnp.dot(hz.reshape(bt * n_node, d_cat), wc_ref[...],
                preferred_element_type=jnp.float32) + bc_ref[...]
    y = _gelu_exact(y)
    o_ref[...] = y.reshape(bt, n_node, o_ref.shape[-1]).astype(o_ref.dtype)


def fused_graph_layer(z0aug, AT, ea3, sp3, Hin, WdWp, Wcat, bcat, *,
                      k, n_head, n_node, eps, temperature, batch_tile=8):
    bs, _, d_in = Hin.shape
    h1 = z0aug.shape[-1]
    h = h1 - 1
    gn = n_head * n_node
    d_out = Wcat.shape[-1]

    bt = min(batch_tile, bs)
    pad = (-bs) % bt
    if pad:
        pb = lambda x: jnp.pad(x, [(0, pad)] + [(0, 0)] * (x.ndim - 1))
        z0aug, AT, ea3, sp3, Hin = pb(z0aug), pb(AT), pb(ea3), pb(sp3), pb(Hin)
    n_steps = (bs + pad) // bt

    kern = functools.partial(_layer_kernel, k=k, n_head=n_head, n_node=n_node,
                             eps=eps, temperature=temperature)
    out = pl.pallas_call(
        kern,
        out_shape=jax.ShapeDtypeStruct((bs + pad, n_node, d_out), jnp.float32),
        grid=(n_steps,),
        in_specs=[
            pl.BlockSpec((bt, n_node, h1), lambda b: (b, 0, 0)),
            pl.BlockSpec((bt, 2, gn, gn), lambda b: (b, 0, 0, 0)),
            pl.BlockSpec((bt, n_node, 1), lambda b: (b, 0, 0)),
            pl.BlockSpec((bt, 1, h), lambda b: (b, 0, 0)),
            pl.BlockSpec((k, gn + 1, h1), lambda b: (0, 0, 0)),
            pl.BlockSpec((bt, n_node, d_in), lambda b: (b, 0, 0)),
            pl.BlockSpec((d_in + h, d_out), lambda b: (0, 0)),
            pl.BlockSpec((1, d_out), lambda b: (0, 0)),
        ],
        out_specs=pl.BlockSpec((bt, n_node, d_out), lambda b: (b, 0, 0)),
        compiler_params=pltpu.CompilerParams(dimension_semantics=("parallel",)),
    )(z0aug, AT, ea3, sp3, WdWp, Hin, Wcat, bcat)
    return out[:bs] if pad else out


# ---------------------------------------------------------------------------
# Plain-JAX glue: TypedLinear, MLPs (PathAttentionLayer), operand preparation.
# (These act on tiny (bs, sent_dim) tensors; not worth separate Pallas kernels.)
# ---------------------------------------------------------------------------
def linear(x, w, b):                 # torch Linear convention: w is (out, in)
    return x @ w.T + b


def layer_norm(x, g, b, eps=1e-5):
    mu = jnp.mean(x, axis=-1, keepdims=True)
    var = jnp.mean((x - mu) ** 2, axis=-1, keepdims=True)
    return (x - mu) / jnp.sqrt(var + eps) * g + b


def mlp_forward(x, p):
    # Linear -> (Dropout: identity in eval) -> LayerNorm -> GELU -> Linear
    hid = layer_norm(linear(x, p['w0'], p['b0']), p['ln_g'], p['ln_b'])
    hid = jax.nn.gelu(hid, approximate=False)
    return linear(hid, p['w1'], p['b1'])


def typed_linear(H, node_type, w, b, n_type, h_out):
    bs, n_node, _ = H.shape
    out = linear(H, w, b).reshape(bs, n_node, n_type, h_out)
    sel = jax.nn.one_hot(node_type, n_type, dtype=out.dtype)
    return jnp.einsum('bnth,bnt->bnh', out, sel)


def path_attention(S, node_type, p, n_head):
    bs = S.shape[0]
    sl = mlp_forward(S, p['start_mlp'])
    sl = jnp.exp(sl - jnp.max(sl, axis=1, keepdims=True))
    start_attn = jnp.take_along_axis(sl, node_type, axis=1)
    el = mlp_forward(S, p['end_mlp'])
    el = jnp.exp(el - jnp.max(el, axis=1, keepdims=True))
    end_attn = jnp.take_along_axis(el, node_type, axis=1)
    ul = mlp_forward(S, p['uni_mlp'])
    uni_attn = jnp.exp(ul - jnp.max(ul, axis=1, keepdims=True))
    ts = jnp.broadcast_to(p['trans_scores'][None, :], (bs, n_head * n_head))
    trans_attn = jnp.exp(ts - jnp.max(ts, axis=1, keepdims=True))
    return start_attn, end_attn, uni_attn, trans_attn.reshape(bs, n_head, n_head)


def graph_relation_layer(S, H, A_blk, node_type, p, cfg):
    h, k, nh, nt = cfg['hidden'], cfg['k'], cfg['n_head'], cfg['n_type']
    bs, n_node, d_in = H.shape
    gn = nh * n_node

    X = typed_linear(H, node_type, p['tt_w'], p['tt_b'], nt, h)
    start_attn, end_attn, uni_attn, trans_attn = path_attention(
        S, node_type, p, nh)
    sproj = linear(S, p['wqs_w'], p['wqs_b'])                    # (bs, hidden)

    # 1) augmented start state: [X*start_attn | start_attn]  (folded denominator)
    sa = start_attn[..., None]
    z0aug = jnp.concatenate([X * sa, sa], axis=-1)               # (bs, N, h+1)

    # 2) block-diag adjacency with uni_attn folded into its columns (exact since
    #    A is a 0/1 mask), stacked with kron(trans_attn^T, I_N) -> single DMA.
    ua_cols = jnp.repeat(uni_attn, n_node, axis=1)               # (bs, GN)
    A_ua = A_blk * ua_cols[:, None, :]                           # (bs, GN, GN)
    T = jnp.einsum('bfg,mn->bgmfn', trans_attn,
                   jnp.eye(n_node, dtype=jnp.float32)).reshape(bs, gn, gn)
    AT = jnp.stack([A_ua, T], axis=1)                            # (bs, 2, GN, GN)

    # 3) hop weights (diag decomposition) with a ones-column for the folded
    #    denominator; W_pad appended as the last row of the same array.
    w_vs = p['w_vs']                                             # (k, h, nh+1)
    W, Wi = w_vs[:, :, :-1], w_vs[:, :, -1]
    wpad = [jnp.ones((h,), jnp.float32)]
    for t in range(k - 1):
        wpad = [Wi[k - 1 - t] * wpad[0]] + wpad
    Wpad = jnp.stack(wpad, axis=0)                               # (k, h)
    Wd = jnp.transpose(W, (0, 2, 1))                             # (k, nh, h)
    Wd_aug = jnp.concatenate([Wd, jnp.ones((k, nh, 1), jnp.float32)], -1)
    Wd_aug = jnp.repeat(Wd_aug, n_node, axis=1)                  # (k, GN, h+1)
    Wpad_aug = jnp.concatenate([Wpad, jnp.ones((k, 1), jnp.float32)], -1)
    WdWp = jnp.concatenate([Wd_aug, Wpad_aug[:, None, :]], axis=1)  # (k, GN+1, h+1)

    # 4) fused output projection: [H | Z] @ [Vh^T ; Vz^T] + (bh + bz)
    Wcat = jnp.concatenate([p['vh_w'].T, p['vz_w'].T], axis=0)   # (d_in+h, d_out)
    bcat = (p['vh_b'] + p['vz_b'])[None, :]                      # (1, d_out)

    return fused_graph_layer(
        z0aug, AT, end_attn[..., None], sproj[:, None, :], H, WdWp, Wcat, bcat,
        k=k, n_head=nh, n_node=n_node, eps=cfg['eps'],
        temperature=math.sqrt(h), batch_tile=cfg.get('batch_tile', 8))
    # nn.Dropout is identity in eval mode.


def graph_relation_encoder(S, H, A, node_type, layer_params, cfg):
    bs, nh, n_node, _ = A.shape
    # Block-diagonal adjacency (one block per head), built once for all layers.
    A_blk = jnp.einsum('bgmn,gh->bgmhn', A,
                       jnp.eye(nh, dtype=A.dtype)
                       ).reshape(bs, nh * n_node, nh * n_node)
    for p in layer_params:
        H = graph_relation_layer(S, H, A_blk, node_type, p, cfg)
    return H


# ---------------------------------------------------------------------------
# Deterministic parameter initialization (shapes follow the torch __init__).
# ---------------------------------------------------------------------------
def _uniform(key, shape, scale):
    return jax.random.uniform(key, shape, jnp.float32, -scale, scale)


def init_mlp(key, d_in, d_hid, d_out):
    k0, k1, k2, k3 = jax.random.split(key, 4)
    s0, s1 = 1.0 / math.sqrt(d_in), 1.0 / math.sqrt(d_hid)
    return dict(
        w0=_uniform(k0, (d_hid, d_in), s0), b0=_uniform(k1, (d_hid,), s0),
        ln_g=jnp.ones((d_hid,), jnp.float32),
        ln_b=jnp.zeros((d_hid,), jnp.float32),
        w1=_uniform(k2, (d_out, d_hid), s1), b1=_uniform(k3, (d_out,), s1),
    )


def init_layer(key, cfg):
    keys = jax.random.split(key, 12)
    d, h, st, at = cfg['d_node'], cfg['hidden'], cfg['sent_dim'], cfg['att_dim']
    nt, nh, k = cfg['n_type'], cfg['n_head'], cfg['k']
    sd, sh = 1.0 / math.sqrt(d), 1.0 / math.sqrt(h)
    return dict(
        tt_w=_uniform(keys[0], (nt * h, d), sd),          # TypedLinear
        tt_b=_uniform(keys[1], (nt * h,), sd),
        start_mlp=init_mlp(keys[2], st, at, nt),
        end_mlp=init_mlp(keys[3], st, at, nt),
        uni_mlp=init_mlp(keys[4], st, at, nh),
        trans_scores=jnp.zeros((nh * nh,), jnp.float32),  # matches torch init
        w_vs=_uniform(keys[5], (k, h, nh + 1), 0.01),     # diag_decompose
        wqs_w=(jax.random.normal(keys[6], (h, st), jnp.float32)
               * math.sqrt(2.0 / (st + h))),
        wqs_b=jnp.zeros((h,), jnp.float32),
        vh_w=_uniform(keys[7], (d, d), sd), vh_b=_uniform(keys[8], (d,), sd),
        vz_w=_uniform(keys[9], (d, h), sh), vz_b=_uniform(keys[10], (d,), sh),
    )


if __name__ == "__main__":
    cfg = dict(k=2, n_type=3, n_head=4, n_basis=0, n_layer=2,
               d_node=32, hidden=32, sent_dim=24, att_dim=16,
               att_layer_num=1, dropout=0.1, diag_decompose=True, eps=1e-20,
               batch_tile=8)
    bs, n_node = 2, 16

    key = jax.random.PRNGKey(0)
    k_s, k_h, k_a, k_t, k_p = jax.random.split(key, 5)
    S = jax.random.normal(k_s, (bs, cfg['sent_dim']), jnp.float32)
    H = jax.random.normal(k_h, (bs, n_node, cfg['d_node']), jnp.float32)
    A = (jax.random.uniform(k_a, (bs, cfg['n_head'], n_node, n_node)) < 0.3
         ).astype(jnp.float32)
    node_type_ids = jax.random.randint(
        k_t, (bs, n_node), 0, cfg['n_type'], jnp.int32)
    layer_params = [init_layer(kk, cfg)
                    for kk in jax.random.split(k_p, cfg['n_layer'])]

    fwd = jax.jit(functools.partial(graph_relation_encoder, cfg=cfg))
    out = fwd(S, H, A, node_type_ids, layer_params)
    out = jax.block_until_ready(out)
    assert out.shape == (bs, n_node, cfg['d_node'])
    assert bool(jnp.all(jnp.isfinite(out)))
    print("KERNEL_OK")
</pallas_src>

<mosaic_0001>
module attributes {stable_mosaic.version = 11 : i64} {
  func.func @_layer_kernel(%arg0: i32, %arg1: memref<2x16x33xf32, #tpu.memory_space<vmem>>, %arg2: memref<2x2x64x64xf32, #tpu.memory_space<vmem>>, %arg3: memref<2x16x1xf32, #tpu.memory_space<vmem>>, %arg4: memref<2x1x32xf32, #tpu.memory_space<vmem>>, %arg5: memref<2x65x33xf32, #tpu.memory_space<vmem>>, %arg6: memref<2x16x32xf32, #tpu.memory_space<vmem>>, %arg7: memref<64x32xf32, #tpu.memory_space<vmem>>, %arg8: memref<1x32xf32, #tpu.memory_space<vmem>>, %arg9: memref<2x16x32xf32, #tpu.memory_space<vmem>>) attributes {dimension_semantics = [#tpu.dimension_semantics<parallel>], iteration_bounds = array<i64: 1>, scalar_prefetch = 0 : i64, scratch_operands = 0 : i64, tpu.core_type = #tpu.core_type<tc>, window_params = [{transform_indices = @transform_0, window_bounds = array<i64: 2, 16, 33>}, {transform_indices = @transform_1, window_bounds = array<i64: 2, 2, 64, 64>}, {transform_indices = @transform_2, window_bounds = array<i64: 2, 16, 1>}, {transform_indices = @transform_3, window_bounds = array<i64: 2, 1, 32>}, {pipeline_mode = #tpu.pipeline_mode<synchronous>, transform_indices = @transform_4, window_bounds = array<i64: 2, 65, 33>}, {transform_indices = @transform_5, window_bounds = array<i64: 2, 16, 32>}, {pipeline_mode = #tpu.pipeline_mode<synchronous>, transform_indices = @transform_6, window_bounds = array<i64: 64, 32>}, {pipeline_mode = #tpu.pipeline_mode<synchronous>, transform_indices = @transform_7, window_bounds = array<i64: 1, 32>}, {transform_indices = @transform_8, window_bounds = array<i64: 2, 16, 32>}]} {
    %c0 = arith.constant 0 : index
    %c0_0 = arith.constant 0 : index
    %c0_1 = arith.constant 0 : index
    %c0_2 = arith.constant 0 : index
    %0 = vector.load %arg2[%c0, %c0_0, %c0_1, %c0_2] : memref<2x2x64x64xf32, #tpu.memory_space<vmem>>, vector<2x1x64x64xf32>
    %1 = vector.shape_cast %0 : vector<2x1x64x64xf32> to vector<2x64x64xf32>
    %c0_3 = arith.constant 0 : index
    %c1 = arith.constant 1 : index
    %c0_4 = arith.constant 0 : index
    %c0_5 = arith.constant 0 : index
    %2 = vector.load %arg2[%c0_3, %c1, %c0_4, %c0_5] : memref<2x2x64x64xf32, #tpu.memory_space<vmem>>, vector<2x1x64x64xf32>
    %3 = vector.shape_cast %2 : vector<2x1x64x64xf32> to vector<2x64x64xf32>
    %c0_6 = arith.constant 0 : index
    %c0_7 = arith.constant 0 : index
    %c0_8 = arith.constant 0 : index
    %4 = vector.load %arg3[%c0_6, %c0_7, %c0_8] : memref<2x16x1xf32, #tpu.memory_space<vmem>>, vector<2x16x1xf32>
    %c0_9 = arith.constant 0 : index
    %c0_10 = arith.constant 0 : index
    %c0_11 = arith.constant 0 : index
    %5 = vector.load %arg4[%c0_9, %c0_10, %c0_11] : memref<2x1x32xf32, #tpu.memory_space<vmem>>, vector<2x1x32xf32>
    %c0_12 = arith.constant 0 : index
    %c0_13 = arith.constant 0 : index
    %c0_14 = arith.constant 0 : index
    %6 = vector.load %arg1[%c0_12, %c0_13, %c0_14] : memref<2x16x33xf32, #tpu.memory_space<vmem>>, vector<2x16x33xf32>
    %7 = tpu.concatenate %6, %6, %6, %6 in 1 : vector<2x16x33xf32>, vector<2x16x33xf32>, vector<2x16x33xf32>, vector<2x16x33xf32> -> vector<2x64x33xf32>
    %c0_15 = arith.constant 0 : index
    %c0_16 = arith.constant 0 : index
    %c0_17 = arith.constant 0 : index
    %8 = vector.load %arg5[%c0_15, %c0_16, %c0_17] : memref<2x65x33xf32, #tpu.memory_space<vmem>>, vector<1x64x33xf32>
    %9 = vector.shape_cast %8 : vector<1x64x33xf32> to vector<64x33xf32>
    %10 = vector.shape_cast %9 : vector<64x33xf32> to vector<1x64x33xf32>
    %11 = vector.broadcast %10 : vector<1x64x33xf32> to vector<2x64x33xf32>
    %12 = arith.mulf %7, %11 : vector<2x64x33xf32>
    "tpu.trace_start"() <{level = 10 : i32, message = "bMN,bNd->bMd"}> : () -> ()
    %cst = arith.constant dense<0.000000e+00> : vector<2x64x33xf32>
    %13 = tpu.matmul %1, %12, %cst {dimension_numbers = #tpu.dot_dimension_numbers<[2], [1], [1], [2], [0, 0, 0, 1, 1, 2], [0], [0]>} : vector<2x64x64xf32>, vector<2x64x33xf32>, vector<2x64x33xf32> -> vector<2x64x33xf32>
    "tpu.trace_stop"() : () -> ()
    %14 = vector.extract_strided_slice %13 {offsets = [0, 0, 0], sizes = [2, 16, 33], strides = [1, 1, 1]} : vector<2x64x33xf32> to vector<2x16x33xf32>
    %15 = vector.extract_strided_slice %13 {offsets = [0, 16, 0], sizes = [2, 16, 33], strides = [1, 1, 1]} : vector<2x64x33xf32> to vector<2x16x33xf32>
    %16 = arith.addf %14, %15 : vector<2x16x33xf32>
    %17 = vector.extract_strided_slice %13 {offsets = [0, 32, 0], sizes = [2, 16, 33], strides = [1, 1, 1]} : vector<2x64x33xf32> to vector<2x16x33xf32>
    %18 = arith.addf %16, %17 : vector<2x16x33xf32>
    %19 = vector.extract_strided_slice %13 {offsets = [0, 48, 0], sizes = [2, 16, 33], strides = [1, 1, 1]} : vector<2x64x33xf32> to vector<2x16x33xf32>
    %20 = arith.addf %18, %19 : vector<2x16x33xf32>
    %c0_18 = arith.constant 0 : index
    %c64 = arith.constant 64 : index
    %c0_19 = arith.constant 0 : index
    %21 = vector.load %arg5[%c0_18, %c64, %c0_19] : memref<2x65x33xf32, #tpu.memory_space<vmem>>, vector<1x1x33xf32>
    %22 = vector.shape_cast %21 : vector<1x1x33xf32> to vector<1x33xf32>
    %23 = vector.shape_cast %22 : vector<1x33xf32> to vector<1x1x33xf32>
    %24 = vector.broadcast %23 : vector<1x1x33xf32> to vector<2x16x33xf32>
    %25 = arith.mulf %20, %24 : vector<2x16x33xf32>
    %26 = vector.broadcast %4 : vector<2x16x1xf32> to vector<2x16x33xf32>
    %27 = arith.mulf %25, %26 : vector<2x16x33xf32>
    %28 = vector.extract_strided_slice %27 {offsets = [0, 0, 0], sizes = [2, 16, 32], strides = [1, 1, 1]} : vector<2x16x33xf32> to vector<2x16x32xf32>
    %29 = vector.extract_strided_slice %27 {offsets = [0, 0, 32], sizes = [2, 16, 1], strides = [1, 1, 1]} : vector<2x16x33xf32> to vector<2x16x1xf32>
    %cst_20 = arith.constant 9.99999968E-21 : f32
    %30 = vector.broadcast %cst_20 : f32 to vector<2x16x1xf32>
    %31 = arith.addf %29, %30 : vector<2x16x1xf32>
    %32 = tpu.reciprocal %31 {approx = true} : vector<2x16x1xf32> -> vector<2x16x1xf32>
    %33 = vector.broadcast %32 : vector<2x16x1xf32> to vector<2x16x32xf32>
    %34 = arith.mulf %28, %33 : vector<2x16x32xf32>
    "tpu.trace_start"() <{level = 10 : i32, message = "bMN,bNd->bMd"}> : () -> ()
    %cst_21 = arith.constant dense<0.000000e+00> : vector<2x64x33xf32>
    %35 = tpu.matmul %3, %13, %cst_21 {dimension_numbers = #tpu.dot_dimension_numbers<[2], [1], [1], [2], [0, 0, 0, 1, 1, 2], [0], [0]>} : vector<2x64x64xf32>, vector<2x64x33xf32>, vector<2x64x33xf32> -> vector<2x64x33xf32>
    "tpu.trace_stop"() : () -> ()
    %c1_22 = arith.constant 1 : index
    %c0_23 = arith.constant 0 : index
    %c0_24 = arith.constant 0 : index
    %36 = vector.load %arg5[%c1_22, %c0_23, %c0_24] : memref<2x65x33xf32, #tpu.memory_space<vmem>>, vector<1x64x33xf32>
    %37 = vector.shape_cast %36 : vector<1x64x33xf32> to vector<64x33xf32>
    %38 = vector.shape_cast %37 : vector<64x33xf32> to vector<1x64x33xf32>
    %39 = vector.broadcast %38 : vector<1x64x33xf32> to vector<2x64x33xf32>
    %40 = arith.mulf %35, %39 : vector<2x64x33xf32>
    "tpu.trace_start"() <{level = 10 : i32, message = "bMN,bNd->bMd"}> : () -> ()
    %cst_25 = arith.constant dense<0.000000e+00> : vector<2x64x33xf32>
    %41 = tpu.matmul %1, %40, %cst_25 {dimension_numbers = #tpu.dot_dimension_numbers<[2], [1], [1], [2], [0, 0, 0, 1, 1, 2], [0], [0]>} : vector<2x64x64xf32>, vector<2x64x33xf32>, vector<2x64x33xf32> -> vector<2x64x33xf32>
    "tpu.trace_stop"() : () -> ()
    %42 = vector.extract_strided_slice %41 {offsets = [0, 0, 0], sizes = [2, 16, 33], strides = [1, 1, 1]} : vector<2x64x33xf32> to vector<2x16x33xf32>
    %43 = vector.extract_strided_slice %41 {offsets = [0, 16, 0], sizes = [2, 16, 33], strides = [1, 1, 1]} : vector<2x64x33xf32> to vector<2x16x33xf32>
    %44 = arith.addf %42, %43 : vector<2x16x33xf32>
    %45 = vector.extract_strided_slice %41 {offsets = [0, 32, 0], sizes = [2, 16, 33], strides = [1, 1, 1]} : vector<2x64x33xf32> to vector<2x16x33xf32>
    %46 = arith.addf %44, %45 : vector<2x16x33xf32>
    %47 = vector.extract_strided_slice %41 {offsets = [0, 48, 0], sizes = [2, 16, 33], strides = [1, 1, 1]} : vector<2x64x33xf32> to vector<2x16x33xf32>
    %48 = arith.addf %46, %47 : vector<2x16x33xf32>
    %c1_26 = arith.constant 1 : index
    %c64_27 = arith.constant 64 : index
    %c0_28 = arith.constant 0 : index
    %49 = vector.load %arg5[%c1_26, %c64_27, %c0_28] : memref<2x65x33xf32, #tpu.memory_space<vmem>>, vector<1x1x33xf32>
    %50 = vector.shape_cast %49 : vector<1x1x33xf32> to vector<1x33xf32>
    %51 = vector.shape_cast %50 : vector<1x33xf32> to vector<1x1x33xf32>
    %52 = vector.broadcast %51 : vector<1x1x33xf32> to vector<2x16x33xf32>
    %53 = arith.mulf %48, %52 : vector<2x16x33xf32>
    %54 = vector.broadcast %4 : vector<2x16x1xf32> to vector<2x16x33xf32>
    %55 = arith.mulf %53, %54 : vector<2x16x33xf32>
    %56 = vector.extract_strided_slice %55 {offsets = [0, 0, 0], sizes = [2, 16, 32], strides = [1, 1, 1]} : vector<2x16x33xf32> to vector<2x16x32xf32>
    %57 = vector.extract_strided_slice %55 {offsets = [0, 0, 32], sizes = [2, 16, 1], strides = [1, 1, 1]} : vector<2x16x33xf32> to vector<2x16x1xf32>
    %cst_29 = arith.constant 9.99999968E-21 : f32
    %58 = vector.broadcast %cst_29 : f32 to vector<2x16x1xf32>
    %59 = arith.addf %57, %58 : vector<2x16x1xf32>
    %60 = tpu.reciprocal %59 {approx = true} : vector<2x16x1xf32> -> vector<2x16x1xf32>
    %61 = vector.broadcast %60 : vector<2x16x1xf32> to vector<2x16x32xf32>
    %62 = arith.mulf %56, %61 : vector<2x16x32xf32>
    %63 = vector.broadcast %5 : vector<2x1x32xf32> to vector<2x16x32xf32>
    %64 = arith.mulf %34, %63 : vector<2x16x32xf32>
    %cst_30 = arith.constant dense<0.000000e+00> : vector<2x16xf32>
    %65 = vector.multi_reduction <add>, %64, %cst_30 [2] : vector<2x16x32xf32> to vector<2x16xf32>
    %66 = vector.shape_cast %65 : vector<2x16xf32> to vector<2x16x1xf32>
    %67 = vector.broadcast %5 : vector<2x1x32xf32> to vector<2x16x32xf32>
    %68 = arith.mulf %62, %67 : vector<2x16x32xf32>
    %cst_31 = arith.constant dense<0.000000e+00> : vector<2x16xf32>
    %69 = vector.multi_reduction <add>, %68, %cst_31 [2] : vector<2x16x32xf32> to vector<2x16xf32>
    %70 = vector.shape_cast %69 : vector<2x16xf32> to vector<2x16x1xf32>
    %71 = tpu.concatenate %66, %70 in 2 : vector<2x16x1xf32>, vector<2x16x1xf32> -> vector<2x16x2xf32>
    %cst_32 = arith.constant 0.176776692 : f32
    %72 = vector.broadcast %cst_32 : f32 to vector<2x16x2xf32>
    %73 = arith.mulf %71, %72 : vector<2x16x2xf32>
    %cst_33 = arith.constant dense<0xFF800000> : vector<2x16xf32>
    %74 = vector.multi_reduction <maximumf>, %73, %cst_33 [2] : vector<2x16x2xf32> to vector<2x16xf32>
    %75 = vector.shape_cast %74 : vector<2x16xf32> to vector<2x16x1xf32>
    %76 = vector.broadcast %75 : vector<2x16x1xf32> to vector<2x16x2xf32>
    %77 = arith.subf %73, %76 : vector<2x16x2xf32>
    %78 = math.exp %77 : vector<2x16x2xf32>
    %cst_34 = arith.constant dense<0.000000e+00> : vector<2x16xf32>
    %79 = vector.multi_reduction <add>, %78, %cst_34 [2] : vector<2x16x2xf32> to vector<2x16xf32>
    %80 = vector.shape_cast %79 : vector<2x16xf32> to vector<2x16x1xf32>
    %81 = tpu.reciprocal %80 {approx = true} : vector<2x16x1xf32> -> vector<2x16x1xf32>
    %82 = vector.broadcast %81 : vector<2x16x1xf32> to vector<2x16x2xf32>
    %83 = arith.mulf %78, %82 : vector<2x16x2xf32>
    %84 = vector.extract_strided_slice %83 {offsets = [0, 0, 0], sizes = [2, 16, 1], strides = [1, 1, 1]} : vector<2x16x2xf32> to vector<2x16x1xf32>
    %85 = vector.broadcast %84 : vector<2x16x1xf32> to vector<2x16x32xf32>
    %86 = arith.mulf %85, %34 : vector<2x16x32xf32>
    %87 = vector.extract_strided_slice %83 {offsets = [0, 0, 1], sizes = [2, 16, 1], strides = [1, 1, 1]} : vector<2x16x2xf32> to vector<2x16x1xf32>
    %88 = vector.broadcast %87 : vector<2x16x1xf32> to vector<2x16x32xf32>
    %89 = arith.mulf %88, %62 : vector<2x16x32xf32>
    %90 = arith.addf %86, %89 : vector<2x16x32xf32>
    %c0_35 = arith.constant 0 : index
    %c0_36 = arith.constant 0 : index
    %c0_37 = arith.constant 0 : index
    %91 = vector.load %arg6[%c0_35, %c0_36, %c0_37] : memref<2x16x32xf32, #tpu.memory_space<vmem>>, vector<2x16x32xf32>
    %92 = tpu.concatenate %91, %90 in 2 : vector<2x16x32xf32>, vector<2x16x32xf32> -> vector<2x16x64xf32>
    %93 = vector.shape_cast %92 : vector<2x16x64xf32> to vector<32x64xf32>
    %c0_38 = arith.constant 0 : index
    %c0_39 = arith.constant 0 : index
    %94 = vector.load %arg7[%c0_38, %c0_39] : memref<64x32xf32, #tpu.memory_space<vmem>>, vector<64x32xf32>
    %cst_40 = arith.constant dense<0.000000e+00> : vector<32x32xf32>
    %95 = tpu.matmul %93, %94, %cst_40 {dimension_numbers = #tpu.dot_dimension_numbers<[1], [0], [0], [1], [0, 0, 1, 1], [], []>} : vector<32x64xf32>, vector<64x32xf32>, vector<32x32xf32> -> vector<32x32xf32>
    %c0_41 = arith.constant 0 : index
    %c0_42 = arith.constant 0 : index
    %96 = vector.load %arg8[%c0_41, %c0_42] : memref<1x32xf32, #tpu.memory_space<vmem>>, vector<1x32xf32>
    %97 = vector.broadcast %96 : vector<1x32xf32> to vector<32x32xf32>
    %98 = arith.addf %95, %97 : vector<32x32xf32>
    %cst_43 = arith.constant 5.000000e-01 : f32
    %99 = vector.broadcast %cst_43 : f32 to vector<32x32xf32>
    %100 = arith.mulf %99, %98 : vector<32x32xf32>
    %cst_44 = arith.constant 0.707106769 : f32
    %101 = vector.broadcast %cst_44 : f32 to vector<32x32xf32>
    %102 = arith.mulf %98, %101 : vector<32x32xf32>
    %103 = math.absf %102 : vector<32x32xf32>
    %cst_45 = arith.constant 0.327591091 : f32
    %104 = vector.broadcast %cst_45 : f32 to vector<32x32xf32>
    %105 = arith.mulf %104, %103 : vector<32x32xf32>
    %cst_46 = arith.constant 1.000000e+00 : f32
    %106 = vector.broadcast %cst_46 : f32 to vector<32x32xf32>
    %107 = arith.addf %106, %105 : vector<32x32xf32>
    %cst_47 = arith.constant 1.000000e+00 : f32
    %108 = vector.broadcast %cst_47 : f32 to vector<32x32xf32>
    %109 = arith.divf %108, %107 : vector<32x32xf32>
    %cst_48 = arith.constant 1.06140542 : f32
    %110 = vector.broadcast %cst_48 : f32 to vector<32x32xf32>
    %111 = arith.mulf %110, %109 : vector<32x32xf32>
    %cst_49 = arith.constant -1.45315206 : f32
    %112 = vector.broadcast %cst_49 : f32 to vector<32x32xf32>
    %113 = arith.addf %111, %112 : vector<32x32xf32>
    %114 = arith.mulf %113, %109 : vector<32x32xf32>
    %cst_50 = arith.constant 1.42141378 : f32
    %115 = vector.broadcast %cst_50 : f32 to vector<32x32xf32>
    %116 = arith.addf %114, %115 : vector<32x32xf32>
    %117 = arith.mulf %116, %109 : vector<32x32xf32>
    %cst_51 = arith.constant -0.284496725 : f32
    %118 = vector.broadcast %cst_51 : f32 to vector<32x32xf32>
    %119 = arith.addf %117, %118 : vector<32x32xf32>
    %120 = arith.mulf %119, %109 : vector<32x32xf32>
    %cst_52 = arith.constant 0.254829586 : f32
    %121 = vector.broadcast %cst_52 : f32 to vector<32x32xf32>
    %122 = arith.addf %120, %121 : vector<32x32xf32>
    %123 = arith.mulf %122, %109 : vector<32x32xf32>
    %cst_53 = arith.constant 0.000000e+00 : f32
    %124 = vector.broadcast %cst_53 : f32 to vector<32x32xf32>
    %125 = arith.subf %124, %103 : vector<32x32xf32>
    %126 = arith.mulf %125, %103 : vector<32x32xf32>
    %127 = math.exp %126 : vector<32x32xf32>
    %128 = arith.mulf %123, %127 : vector<32x32xf32>
    %cst_54 = arith.constant 1.000000e+00 : f32
    %129 = vector.broadcast %cst_54 : f32 to vector<32x32xf32>
    %130 = arith.subf %129, %128 : vector<32x32xf32>
    %cst_55 = arith.constant 0.000000e+00 : f32
    %131 = vector.broadcast %cst_55 : f32 to vector<32x32xf32>
    %132 = arith.cmpf olt, %102, %131 : vector<32x32xf32>
    %cst_56 = arith.constant 0.000000e+00 : f32
    %133 = vector.broadcast %cst_56 : f32 to vector<32x32xf32>
    %134 = arith.subf %133, %130 : vector<32x32xf32>
    %135 = arith.select %132, %134, %130 : vector<32x32xi1>, vector<32x32xf32>
    %cst_57 = arith.constant 1.000000e+00 : f32
    %136 = vector.broadcast %cst_57 : f32 to vector<32x32xf32>
    %137 = arith.addf %136, %135 : vector<32x32xf32>
    %138 = arith.mulf %100, %137 : vector<32x32xf32>
    %139 = vector.shape_cast %138 : vector<32x32xf32> to vector<2x16x32xf32>
    %c0_58 = arith.constant 0 : index
    %c0_59 = arith.constant 0 : index
    %c0_60 = arith.constant 0 : index
    %140 = vector.load %arg9[%c0_58, %c0_59, %c0_60] : memref<2x16x32xf32, #tpu.memory_space<vmem>>, vector<2x16x32xf32>
    tpu.vector_store %arg9[%c0_58, %c0_59, %c0_60], %139 {strides = array<i32>} : memref<2x16x32xf32, #tpu.memory_space<vmem>>, vector<2x16x32xf32>,
    return
  }
  func.func @transform_0(%arg0: i32) -> (i32, i32, i32) {
    %c0_i32 = arith.constant 0 : i32
    %c0_i32_0 = arith.constant 0 : i32
    %c0_i32_1 = arith.constant 0 : i32
    return %arg0, %c0_i32, %c0_i32_0 : i32, i32, i32
  }
  func.func @transform_1(%arg0: i32) -> (i32, i32, i32, i32) {
    %c0_i32 = arith.constant 0 : i32
    %c0_i32_0 = arith.constant 0 : i32
    %c0_i32_1 = arith.constant 0 : i32
    %c0_i32_2 = arith.constant 0 : i32
    return %arg0, %c0_i32, %c0_i32_0, %c0_i32_1 : i32, i32, i32, i32
  }
  func.func @transform_2(%arg0: i32) -> (i32, i32, i32) {
    %c0_i32 = arith.constant 0 : i32
    %c0_i32_0 = arith.constant 0 : i32
    %c0_i32_1 = arith.constant 0 : i32
    return %arg0, %c0_i32, %c0_i32_0 : i32, i32, i32
  }
  func.func @transform_3(%arg0: i32) -> (i32, i32, i32) {
    %c0_i32 = arith.constant 0 : i32
    %c0_i32_0 = arith.constant 0 : i32
    %c0_i32_1 = arith.constant 0 : i32
    return %arg0, %c0_i32, %c0_i32_0 : i32, i32, i32
  }
  func.func @transform_4(%arg0: i32) -> (i32, i32, i32) {
    %c0_i32 = arith.constant 0 : i32
    %c0_i32_0 = arith.constant 0 : i32
    %c0_i32_1 = arith.constant 0 : i32
    %c0_i32_2 = arith.constant 0 : i32
    return %c0_i32, %c0_i32_0, %c0_i32_1 : i32, i32, i32
  }
  func.func @transform_5(%arg0: i32) -> (i32, i32, i32) {
    %c0_i32 = arith.constant 0 : i32
    %c0_i32_0 = arith.constant 0 : i32
    %c0_i32_1 = arith.constant 0 : i32
    return %arg0, %c0_i32, %c0_i32_0 : i32, i32, i32
  }
  func.func @transform_6(%arg0: i32) -> (i32, i32) {
    %c0_i32 = arith.constant 0 : i32
    %c0_i32_0 = arith.constant 0 : i32
    %c0_i32_1 = arith.constant 0 : i32
    return %c0_i32, %c0_i32_0 : i32, i32
  }
  func.func @transform_7(%arg0: i32) -> (i32, i32) {
    %c0_i32 = arith.constant 0 : i32
    %c0_i32_0 = arith.constant 0 : i32
    %c0_i32_1 = arith.constant 0 : i32
    return %c0_i32, %c0_i32_0 : i32, i32
  }
  func.func @transform_8(%arg0: i32) -> (i32, i32, i32) {
    %c0_i32 = arith.constant 0 : i32
    %c0_i32_0 = arith.constant 0 : i32
    %c0_i32_1 = arith.constant 0 : i32
    return %arg0, %c0_i32, %c0_i32_0 : i32, i32, i32
  }
}

module attributes {stable_mosaic.version = 11 : i64} {
  func.func @_layer_kernel(%arg0: i32, %arg1: memref<2x16x33xf32, #tpu.memory_space<vmem>>, %arg2: memref<2x2x64x64xf32, #tpu.memory_space<vmem>>, %arg3: memref<2x16x1xf32, #tpu.memory_space<vmem>>, %arg4: memref<2x1x32xf32, #tpu.memory_space<vmem>>, %arg5: memref<2x65x33xf32, #tpu.memory_space<vmem>>, %arg6: memref<2x16x32xf32, #tpu.memory_space<vmem>>, %arg7: memref<64x32xf32, #tpu.memory_space<vmem>>, %arg8: memref<1x32xf32, #tpu.memory_space<vmem>>, %arg9: memref<2x16x32xf32, #tpu.memory_space<vmem>>) attributes {dimension_semantics = [#tpu.dimension_semantics<parallel>], iteration_bounds = array<i64: 1>, scalar_prefetch = 0 : i64, scratch_operands = 0 : i64, tpu.core_type = #tpu.core_type<tc>, window_params = [{transform_indices = @transform_0, window_bounds = array<i64: 2, 16, 33>}, {transform_indices = @transform_1, window_bounds = array<i64: 2, 2, 64, 64>}, {transform_indices = @transform_2, window_bounds = array<i64: 2, 16, 1>}, {transform_indices = @transform_3, window_bounds = array<i64: 2, 1, 32>}, {pipeline_mode = #tpu.pipeline_mode<synchronous>, transform_indices = @transform_4, window_bounds = array<i64: 2, 65, 33>}, {transform_indices = @transform_5, window_bounds = array<i64: 2, 16, 32>}, {pipeline_mode = #tpu.pipeline_mode<synchronous>, transform_indices = @transform_6, window_bounds = array<i64: 64, 32>}, {pipeline_mode = #tpu.pipeline_mode<synchronous>, transform_indices = @transform_7, window_bounds = array<i64: 1, 32>}, {transform_indices = @transform_8, window_bounds = array<i64: 2, 16, 32>}]} {
    %c0 = arith.constant 0 : index
    %c0_0 = arith.constant 0 : index
    %c0_1 = arith.constant 0 : index
    %c0_2 = arith.constant 0 : index
    %0 = vector.load %arg2[%c0, %c0_0, %c0_1, %c0_2] : memref<2x2x64x64xf32, #tpu.memory_space<vmem>>, vector<2x1x64x64xf32>
    %1 = vector.shape_cast %0 : vector<2x1x64x64xf32> to vector<2x64x64xf32>
    %c0_3 = arith.constant 0 : index
    %c1 = arith.constant 1 : index
    %c0_4 = arith.constant 0 : index
    %c0_5 = arith.constant 0 : index
    %2 = vector.load %arg2[%c0_3, %c1, %c0_4, %c0_5] : memref<2x2x64x64xf32, #tpu.memory_space<vmem>>, vector<2x1x64x64xf32>
    %3 = vector.shape_cast %2 : vector<2x1x64x64xf32> to vector<2x64x64xf32>
    %c0_6 = arith.constant 0 : index
    %c0_7 = arith.constant 0 : index
    %c0_8 = arith.constant 0 : index
    %4 = vector.load %arg3[%c0_6, %c0_7, %c0_8] : memref<2x16x1xf32, #tpu.memory_space<vmem>>, vector<2x16x1xf32>
    %c0_9 = arith.constant 0 : index
    %c0_10 = arith.constant 0 : index
    %c0_11 = arith.constant 0 : index
    %5 = vector.load %arg4[%c0_9, %c0_10, %c0_11] : memref<2x1x32xf32, #tpu.memory_space<vmem>>, vector<2x1x32xf32>
    %c0_12 = arith.constant 0 : index
    %c0_13 = arith.constant 0 : index
    %c0_14 = arith.constant 0 : index
    %6 = vector.load %arg1[%c0_12, %c0_13, %c0_14] : memref<2x16x33xf32, #tpu.memory_space<vmem>>, vector<2x16x33xf32>
    %7 = tpu.concatenate %6, %6, %6, %6 in 1 : vector<2x16x33xf32>, vector<2x16x33xf32>, vector<2x16x33xf32>, vector<2x16x33xf32> -> vector<2x64x33xf32>
    %c0_15 = arith.constant 0 : index
    %c0_16 = arith.constant 0 : index
    %c0_17 = arith.constant 0 : index
    %8 = vector.load %arg5[%c0_15, %c0_16, %c0_17] : memref<2x65x33xf32, #tpu.memory_space<vmem>>, vector<1x64x33xf32>
    %9 = vector.shape_cast %8 : vector<1x64x33xf32> to vector<64x33xf32>
    %10 = vector.shape_cast %9 : vector<64x33xf32> to vector<1x64x33xf32>
    %11 = vector.broadcast %10 : vector<1x64x33xf32> to vector<2x64x33xf32>
    %12 = arith.mulf %7, %11 : vector<2x64x33xf32>
    "tpu.trace_start"() <{level = 10 : i32, message = "bMN,bNd->bMd"}> : () -> ()
    %cst = arith.constant dense<0.000000e+00> : vector<2x64x33xf32>
    %13 = tpu.matmul %1, %12, %cst {dimension_numbers = #tpu.dot_dimension_numbers<[2], [1], [1], [2], [0, 0, 0, 1, 1, 2], [0], [0]>} : vector<2x64x64xf32>, vector<2x64x33xf32>, vector<2x64x33xf32> -> vector<2x64x33xf32>
    "tpu.trace_stop"() : () -> ()
    %14 = vector.extract_strided_slice %13 {offsets = [0, 0, 0], sizes = [2, 16, 33], strides = [1, 1, 1]} : vector<2x64x33xf32> to vector<2x16x33xf32>
    %15 = vector.extract_strided_slice %13 {offsets = [0, 16, 0], sizes = [2, 16, 33], strides = [1, 1, 1]} : vector<2x64x33xf32> to vector<2x16x33xf32>
    %16 = arith.addf %14, %15 : vector<2x16x33xf32>
    %17 = vector.extract_strided_slice %13 {offsets = [0, 32, 0], sizes = [2, 16, 33], strides = [1, 1, 1]} : vector<2x64x33xf32> to vector<2x16x33xf32>
    %18 = arith.addf %16, %17 : vector<2x16x33xf32>
    %19 = vector.extract_strided_slice %13 {offsets = [0, 48, 0], sizes = [2, 16, 33], strides = [1, 1, 1]} : vector<2x64x33xf32> to vector<2x16x33xf32>
    %20 = arith.addf %18, %19 : vector<2x16x33xf32>
    %c0_18 = arith.constant 0 : index
    %c64 = arith.constant 64 : index
    %c0_19 = arith.constant 0 : index
    %21 = vector.load %arg5[%c0_18, %c64, %c0_19] : memref<2x65x33xf32, #tpu.memory_space<vmem>>, vector<1x1x33xf32>
    %22 = vector.shape_cast %21 : vector<1x1x33xf32> to vector<1x33xf32>
    %23 = vector.shape_cast %22 : vector<1x33xf32> to vector<1x1x33xf32>
    %24 = vector.broadcast %23 : vector<1x1x33xf32> to vector<2x16x33xf32>
    %25 = arith.mulf %20, %24 : vector<2x16x33xf32>
    %26 = vector.broadcast %4 : vector<2x16x1xf32> to vector<2x16x33xf32>
    %27 = arith.mulf %25, %26 : vector<2x16x33xf32>
    %28 = vector.extract_strided_slice %27 {offsets = [0, 0, 0], sizes = [2, 16, 32], strides = [1, 1, 1]} : vector<2x16x33xf32> to vector<2x16x32xf32>
    %29 = vector.extract_strided_slice %27 {offsets = [0, 0, 32], sizes = [2, 16, 1], strides = [1, 1, 1]} : vector<2x16x33xf32> to vector<2x16x1xf32>
    %cst_20 = arith.constant 9.99999968E-21 : f32
    %30 = vector.broadcast %cst_20 : f32 to vector<2x16x1xf32>
    %31 = arith.addf %29, %30 : vector<2x16x1xf32>
    %32 = tpu.reciprocal %31 {approx = true} : vector<2x16x1xf32> -> vector<2x16x1xf32>
    %33 = vector.broadcast %32 : vector<2x16x1xf32> to vector<2x16x32xf32>
    %34 = arith.mulf %28, %33 : vector<2x16x32xf32>
    "tpu.trace_start"() <{level = 10 : i32, message = "bMN,bNd->bMd"}> : () -> ()
    %cst_21 = arith.constant dense<0.000000e+00> : vector<2x64x33xf32>
    %35 = tpu.matmul %3, %13, %cst_21 {dimension_numbers = #tpu.dot_dimension_numbers<[2], [1], [1], [2], [0, 0, 0, 1, 1, 2], [0], [0]>} : vector<2x64x64xf32>, vector<2x64x33xf32>, vector<2x64x33xf32> -> vector<2x64x33xf32>
    "tpu.trace_stop"() : () -> ()
    %c1_22 = arith.constant 1 : index
    %c0_23 = arith.constant 0 : index
    %c0_24 = arith.constant 0 : index
    %36 = vector.load %arg5[%c1_22, %c0_23, %c0_24] : memref<2x65x33xf32, #tpu.memory_space<vmem>>, vector<1x64x33xf32>
    %37 = vector.shape_cast %36 : vector<1x64x33xf32> to vector<64x33xf32>
    %38 = vector.shape_cast %37 : vector<64x33xf32> to vector<1x64x33xf32>
    %39 = vector.broadcast %38 : vector<1x64x33xf32> to vector<2x64x33xf32>
    %40 = arith.mulf %35, %39 : vector<2x64x33xf32>
    "tpu.trace_start"() <{level = 10 : i32, message = "bMN,bNd->bMd"}> : () -> ()
    %cst_25 = arith.constant dense<0.000000e+00> : vector<2x64x33xf32>
    %41 = tpu.matmul %1, %40, %cst_25 {dimension_numbers = #tpu.dot_dimension_numbers<[2], [1], [1], [2], [0, 0, 0, 1, 1, 2], [0], [0]>} : vector<2x64x64xf32>, vector<2x64x33xf32>, vector<2x64x33xf32> -> vector<2x64x33xf32>
    "tpu.trace_stop"() : () -> ()
    %42 = vector.extract_strided_slice %41 {offsets = [0, 0, 0], sizes = [2, 16, 33], strides = [1, 1, 1]} : vector<2x64x33xf32> to vector<2x16x33xf32>
    %43 = vector.extract_strided_slice %41 {offsets = [0, 16, 0], sizes = [2, 16, 33], strides = [1, 1, 1]} : vector<2x64x33xf32> to vector<2x16x33xf32>
    %44 = arith.addf %42, %43 : vector<2x16x33xf32>
    %45 = vector.extract_strided_slice %41 {offsets = [0, 32, 0], sizes = [2, 16, 33], strides = [1, 1, 1]} : vector<2x64x33xf32> to vector<2x16x33xf32>
    %46 = arith.addf %44, %45 : vector<2x16x33xf32>
    %47 = vector.extract_strided_slice %41 {offsets = [0, 48, 0], sizes = [2, 16, 33], strides = [1, 1, 1]} : vector<2x64x33xf32> to vector<2x16x33xf32>
    %48 = arith.addf %46, %47 : vector<2x16x33xf32>
    %c1_26 = arith.constant 1 : index
    %c64_27 = arith.constant 64 : index
    %c0_28 = arith.constant 0 : index
    %49 = vector.load %arg5[%c1_26, %c64_27, %c0_28] : memref<2x65x33xf32, #tpu.memory_space<vmem>>, vector<1x1x33xf32>
    %50 = vector.shape_cast %49 : vector<1x1x33xf32> to vector<1x33xf32>
    %51 = vector.shape_cast %50 : vector<1x33xf32> to vector<1x1x33xf32>
    %52 = vector.broadcast %51 : vector<1x1x33xf32> to vector<2x16x33xf32>
    %53 = arith.mulf %48, %52 : vector<2x16x33xf32>
    %54 = vector.broadcast %4 : vector<2x16x1xf32> to vector<2x16x33xf32>
    %55 = arith.mulf %53, %54 : vector<2x16x33xf32>
    %56 = vector.extract_strided_slice %55 {offsets = [0, 0, 0], sizes = [2, 16, 32], strides = [1, 1, 1]} : vector<2x16x33xf32> to vector<2x16x32xf32>
    %57 = vector.extract_strided_slice %55 {offsets = [0, 0, 32], sizes = [2, 16, 1], strides = [1, 1, 1]} : vector<2x16x33xf32> to vector<2x16x1xf32>
    %cst_29 = arith.constant 9.99999968E-21 : f32
    %58 = vector.broadcast %cst_29 : f32 to vector<2x16x1xf32>
    %59 = arith.addf %57, %58 : vector<2x16x1xf32>
    %60 = tpu.reciprocal %59 {approx = true} : vector<2x16x1xf32> -> vector<2x16x1xf32>
    %61 = vector.broadcast %60 : vector<2x16x1xf32> to vector<2x16x32xf32>
    %62 = arith.mulf %56, %61 : vector<2x16x32xf32>
    %63 = vector.broadcast %5 : vector<2x1x32xf32> to vector<2x16x32xf32>
    %64 = arith.mulf %34, %63 : vector<2x16x32xf32>
    %cst_30 = arith.constant dense<0.000000e+00> : vector<2x16xf32>
    %65 = vector.multi_reduction <add>, %64, %cst_30 [2] : vector<2x16x32xf32> to vector<2x16xf32>
    %66 = vector.shape_cast %65 : vector<2x16xf32> to vector<2x16x1xf32>
    %67 = vector.broadcast %5 : vector<2x1x32xf32> to vector<2x16x32xf32>
    %68 = arith.mulf %62, %67 : vector<2x16x32xf32>
    %cst_31 = arith.constant dense<0.000000e+00> : vector<2x16xf32>
    %69 = vector.multi_reduction <add>, %68, %cst_31 [2] : vector<2x16x32xf32> to vector<2x16xf32>
    %70 = vector.shape_cast %69 : vector<2x16xf32> to vector<2x16x1xf32>
    %71 = tpu.concatenate %66, %70 in 2 : vector<2x16x1xf32>, vector<2x16x1xf32> -> vector<2x16x2xf32>
    %cst_32 = arith.constant 0.176776692 : f32
    %72 = vector.broadcast %cst_32 : f32 to vector<2x16x2xf32>
    %73 = arith.mulf %71, %72 : vector<2x16x2xf32>
    %cst_33 = arith.constant dense<0xFF800000> : vector<2x16xf32>
    %74 = vector.multi_reduction <maximumf>, %73, %cst_33 [2] : vector<2x16x2xf32> to vector<2x16xf32>
    %75 = vector.shape_cast %74 : vector<2x16xf32> to vector<2x16x1xf32>
    %76 = vector.broadcast %75 : vector<2x16x1xf32> to vector<2x16x2xf32>
    %77 = arith.subf %73, %76 : vector<2x16x2xf32>
    %78 = math.exp %77 : vector<2x16x2xf32>
    %cst_34 = arith.constant dense<0.000000e+00> : vector<2x16xf32>
    %79 = vector.multi_reduction <add>, %78, %cst_34 [2] : vector<2x16x2xf32> to vector<2x16xf32>
    %80 = vector.shape_cast %79 : vector<2x16xf32> to vector<2x16x1xf32>
    %81 = tpu.reciprocal %80 {approx = true} : vector<2x16x1xf32> -> vector<2x16x1xf32>
    %82 = vector.broadcast %81 : vector<2x16x1xf32> to vector<2x16x2xf32>
    %83 = arith.mulf %78, %82 : vector<2x16x2xf32>
    %84 = vector.extract_strided_slice %83 {offsets = [0, 0, 0], sizes = [2, 16, 1], strides = [1, 1, 1]} : vector<2x16x2xf32> to vector<2x16x1xf32>
    %85 = vector.broadcast %84 : vector<2x16x1xf32> to vector<2x16x32xf32>
    %86 = arith.mulf %85, %34 : vector<2x16x32xf32>
    %87 = vector.extract_strided_slice %83 {offsets = [0, 0, 1], sizes = [2, 16, 1], strides = [1, 1, 1]} : vector<2x16x2xf32> to vector<2x16x1xf32>
    %88 = vector.broadcast %87 : vector<2x16x1xf32> to vector<2x16x32xf32>
    %89 = arith.mulf %88, %62 : vector<2x16x32xf32>
    %90 = arith.addf %86, %89 : vector<2x16x32xf32>
    %c0_35 = arith.constant 0 : index
    %c0_36 = arith.constant 0 : index
    %c0_37 = arith.constant 0 : index
    %91 = vector.load %arg6[%c0_35, %c0_36, %c0_37] : memref<2x16x32xf32, #tpu.memory_space<vmem>>, vector<2x16x32xf32>
    %92 = tpu.concatenate %91, %90 in 2 : vector<2x16x32xf32>, vector<2x16x32xf32> -> vector<2x16x64xf32>
    %93 = vector.shape_cast %92 : vector<2x16x64xf32> to vector<32x64xf32>
    %c0_38 = arith.constant 0 : index
    %c0_39 = arith.constant 0 : index
    %94 = vector.load %arg7[%c0_38, %c0_39] : memref<64x32xf32, #tpu.memory_space<vmem>>, vector<64x32xf32>
    %cst_40 = arith.constant dense<0.000000e+00> : vector<32x32xf32>
    %95 = tpu.matmul %93, %94, %cst_40 {dimension_numbers = #tpu.dot_dimension_numbers<[1], [0], [0], [1], [0, 0, 1, 1], [], []>} : vector<32x64xf32>, vector<64x32xf32>, vector<32x32xf32> -> vector<32x32xf32>
    %c0_41 = arith.constant 0 : index
    %c0_42 = arith.constant 0 : index
    %96 = vector.load %arg8[%c0_41, %c0_42] : memref<1x32xf32, #tpu.memory_space<vmem>>, vector<1x32xf32>
    %97 = vector.broadcast %96 : vector<1x32xf32> to vector<32x32xf32>
    %98 = arith.addf %95, %97 : vector<32x32xf32>
    %cst_43 = arith.constant 5.000000e-01 : f32
    %99 = vector.broadcast %cst_43 : f32 to vector<32x32xf32>
    %100 = arith.mulf %99, %98 : vector<32x32xf32>
    %cst_44 = arith.constant 0.707106769 : f32
    %101 = vector.broadcast %cst_44 : f32 to vector<32x32xf32>
    %102 = arith.mulf %98, %101 : vector<32x32xf32>
    %103 = math.absf %102 : vector<32x32xf32>
    %cst_45 = arith.constant 0.327591091 : f32
    %104 = vector.broadcast %cst_45 : f32 to vector<32x32xf32>
    %105 = arith.mulf %104, %103 : vector<32x32xf32>
    %cst_46 = arith.constant 1.000000e+00 : f32
    %106 = vector.broadcast %cst_46 : f32 to vector<32x32xf32>
    %107 = arith.addf %106, %105 : vector<32x32xf32>
    %cst_47 = arith.constant 1.000000e+00 : f32
    %108 = vector.broadcast %cst_47 : f32 to vector<32x32xf32>
    %109 = arith.divf %108, %107 : vector<32x32xf32>
    %cst_48 = arith.constant 1.06140542 : f32
    %110 = vector.broadcast %cst_48 : f32 to vector<32x32xf32>
    %111 = arith.mulf %110, %109 : vector<32x32xf32>
    %cst_49 = arith.constant -1.45315206 : f32
    %112 = vector.broadcast %cst_49 : f32 to vector<32x32xf32>
    %113 = arith.addf %111, %112 : vector<32x32xf32>
    %114 = arith.mulf %113, %109 : vector<32x32xf32>
    %cst_50 = arith.constant 1.42141378 : f32
    %115 = vector.broadcast %cst_50 : f32 to vector<32x32xf32>
    %116 = arith.addf %114, %115 : vector<32x32xf32>
    %117 = arith.mulf %116, %109 : vector<32x32xf32>
    %cst_51 = arith.constant -0.284496725 : f32
    %118 = vector.broadcast %cst_51 : f32 to vector<32x32xf32>
    %119 = arith.addf %117, %118 : vector<32x32xf32>
    %120 = arith.mulf %119, %109 : vector<32x32xf32>
    %cst_52 = arith.constant 0.254829586 : f32
    %121 = vector.broadcast %cst_52 : f32 to vector<32x32xf32>
    %122 = arith.addf %120, %121 : vector<32x32xf32>
    %123 = arith.mulf %122, %109 : vector<32x32xf32>
    %cst_53 = arith.constant 0.000000e+00 : f32
    %124 = vector.broadcast %cst_53 : f32 to vector<32x32xf32>
    %125 = arith.subf %124, %103 : vector<32x32xf32>
    %126 = arith.mulf %125, %103 : vector<32x32xf32>
    %127 = math.exp %126 : vector<32x32xf32>
    %128 = arith.mulf %123, %127 : vector<32x32xf32>
    %cst_54 = arith.constant 1.000000e+00 : f32
    %129 = vector.broadcast %cst_54 : f32 to vector<32x32xf32>
    %130 = arith.subf %129, %128 : vector<32x32xf32>
    %cst_55 = arith.constant 0.000000e+00 : f32
    %131 = vector.broadcast %cst_55 : f32 to vector<32x32xf32>
    %132 = arith.cmpf olt, %102, %131 : vector<32x32xf32>
    %cst_56 = arith.constant 0.000000e+00 : f32
    %133 = vector.broadcast %cst_56 : f32 to vector<32x32xf32>
    %134 = arith.subf %133, %130 : vector<32x32xf32>
    %135 = arith.select %132, %134, %130 : vector<32x32xi1>, vector<32x32xf32>
    %cst_57 = arith.constant 1.000000e+00 : f32
    %136 = vector.broadcast %cst_57 : f32 to vector<32x32xf32>
    %137 = arith.addf %136, %135 : vector<32x32xf32>
    %138 = arith.mulf %100, %137 : vector<32x32xf32>
    %139 = vector.shape_cast %138 : vector<32x32xf32> to vector<2x16x32xf32>
    %c0_58 = arith.constant 0 : index
    %c0_59 = arith.constant 0 : index
    %c0_60 = arith.constant 0 : index
    %140 = vector.load %arg9[%c0_58, %c0_59, %c0_60] : memref<2x16x32xf32, #tpu.memory_space<vmem>>, vector<2x16x32xf32>
    tpu.vector_store %arg9[%c0_58, %c0_59, %c0_60], %139 {strides = array<i32>} : memref<2x16x32xf32, #tpu.memory_space<vmem>>, vector<2x16x32xf32>,
    return
  }
  func.func @transform_0(%arg0: i32) -> (i32, i32, i32) {
    %c0_i32 = arith.constant 0 : i32
    %c0_i32_0 = arith.constant 0 : i32
    %c0_i32_1 = arith.constant 0 : i32
    return %arg0, %c0_i32, %c0_i32_0 : i32, i32, i32
  }
  func.func @transform_1(%arg0: i32) -> (i32, i32, i32, i32) {
    %c0_i32 = arith.constant 0 : i32
    %c0_i32_0 = arith.constant 0 : i32
    %c0_i32_1 = arith.constant 0 : i32
    %c0_i32_2 = arith.constant 0 : i32
    return %arg0, %c0_i32, %c0_i32_0, %c0_i32_1 : i32, i32, i32, i32
  }
  func.func @transform_2(%arg0: i32) -> (i32, i32, i32) {
    %c0_i32 = arith.constant 0 : i32
    %c0_i32_0 = arith.constant 0 : i32
    %c0_i32_1 = arith.constant 0 : i32
    return %arg0, %c0_i32, %c0_i32_0 : i32, i32, i32
  }
  func.func @transform_3(%arg0: i32) -> (i32, i32, i32) {
    %c0_i32 = arith.constant 0 : i32
    %c0_i32_0 = arith.constant 0 : i32
    %c0_i32_1 = arith.constant 0 : i32
    return %arg0, %c0_i32, %c0_i32_0 : i32, i32, i32
  }
  func.func @transform_4(%arg0: i32) -> (i32, i32, i32) {
    %c0_i32 = arith.constant 0 : i32
    %c0_i32_0 = arith.constant 0 : i32
    %c0_i32_1 = arith.constant 0 : i32
    %c0_i32_2 = arith.constant 0 : i32
    return %c0_i32, %c0_i32_0, %c0_i32_1 : i32, i32, i32
  }
  func.func @transform_5(%arg0: i32) -> (i32, i32, i32) {
    %c0_i32 = arith.constant 0 : i32
    %c0_i32_0 = arith.constant 0 : i32
    %c0_i32_1 = arith.constant 0 : i32
    return %arg0, %c0_i32, %c0_i32_0 : i32, i32, i32
  }
  func.func @transform_6(%arg0: i32) -> (i32, i32) {
    %c0_i32 = arith.constant 0 : i32
    %c0_i32_0 = arith.constant 0 : i32
    %c0_i32_1 = arith.constant 0 : i32
    return %c0_i32, %c0_i32_0 : i32, i32
  }
  func.func @transform_7(%arg0: i32) -> (i32, i32) {
    %c0_i32 = arith.constant 0 : i32
    %c0_i32_0 = arith.constant 0 : i32
    %c0_i32_1 = arith.constant 0 : i32
    return %c0_i32, %c0_i32_0 : i32, i32
  }
  func.func @transform_8(%arg0: i32) -> (i32, i32, i32) {
    %c0_i32 = arith.constant 0 : i32
    %c0_i32_0 = arith.constant 0 : i32
    %c0_i32_1 = arith.constant 0 : i32
    return %arg0, %c0_i32, %c0_i32_0 : i32, i32, i32
  }
}

</mosaic_0001>

<bundles_post_ra>
// kernel: mul.113
= control target key start
LH: loop header
LB: loop body
LE: loop exit
PB: predicated region body
PF: predicated region fallthrough
CT: control target
= control target key end

     0   :  { %s29_s10 = smov 3  ;;  %s10_s11 = smov 3  ;;  %vm12_vm0 = vcmask 130048   ;;  %vm19_vm1 = vcmask 523648   ;;  %vm26_vm2 = vcmask 392448   ;;  %vm33_vm3 = vcmask 261248   ;;  %s67_s0 = inlined_call_operand.vmem [shape: f32[2,4,16], index: 0, kind: input, shape index: {}]   ;;  %s68_s1 = inlined_call_operand.vmem [shape: f32[2,64], index: 1, kind: output, shape index: {}]  }
   0x1   :  { %v41_v0 = vld [vmem:[%s67_s0 + $0x4] sm:$0xf]  ;;  %v8_v1 = vld [vmem:[%s67_s0] sm:$0xf]  ;;  %s15_s0 = smov 3  ;;  %s22_s12 = smov 3 }
   0x2   :  { %7 = vst [vmem:[#allocation1 + $0x8] sm:$0xf] %v41_v0  ;;  %9 = vst [vmem:[#allocation1] sm:$0xf] %v8_v1  ;;  %s45_s13 = smov 48   ;;  %s46_s14 = smov 16  }
   0x3   :  { %s47_s15 = smov 32  }
   0x9   :  { %v16_v2 = vld [vmem:[#allocation1 + $0x3] ss:$8 sm:%s15_s0]   ;;  %v30_v3 = vld [vmem:[#allocation1 + $0x1] ss:$8 sm:%s29_s10]   ;;  %v11_v4 = vld [vmem:[#allocation1] ss:$8 sm:%s10_s11]  }
   0xa   :  { %17 = vrot.lane.b32.xlu0 %v16_v2, %s45_s13  ;;  %31 = vrot.lane.b32.xlu1 %v30_v3, %s46_s14  ;;  %v23_v5 = vld [vmem:[#allocation1 + $0x2] ss:$8 sm:%s22_s12]   ;;  %13 = vst.msk [vmem:[#allocation0] sm:$0x3] %vm12_vm0, %v11_v4  }
   0xe   :  { %24 = vrot.lane.b32.xlu0 %v23_v5, %s47_s15 }
  0x7c   :  { %v18_v6 = vpop.permute.xlu0 %17   ;;  %v32_v7 = vpop.permute.xlu1 %31  }
  0x7d   :  { %20 = vst.msk [vmem:[#allocation0] sm:$0x3] %vm19_vm1, %v18_v6  }
  0x80   :  { %v25_v8 = vpop.permute.xlu0 %24  }
  0x81   :  { %27 = vst.msk [vmem:[#allocation0] sm:$0x3] %vm26_vm2, %v25_v8  }
  0x82   :  { %34 = vst.msk [vmem:[#allocation0] sm:$0x3] %vm33_vm3, %v32_v7  }
  0x89   :  { %v38_v9 = vld [vmem:[#allocation0] sm:$0x3] }
  0x8a   :  { %40 = vst [vmem:[%s68_s1] sm:$0x3] %v38_v9 }

// kernel: graph_relation_encoder.3
= control target key start
LH: loop header
LB: loop body
LE: loop exit
PB: predicated region body
PF: predicated region fallthrough
CT: control target
= control target key end

     0   :  { %v1995_v7 = vmov 0   ;;  %vm97_vm0 = vcmask 523264   ;;  %s2519_s0 = inlined_call_operand.vmem [shape: f32[2,16,33], index: 0, kind: input, shape index: {}]   ;;  %s2520_s1 = inlined_call_operand.vmem [shape: f32[2,2,64,64], index: 1, kind: input, shape index: {}]   ;;  %s2521_s2 = inlined_call_operand.vmem [shape: f32[2,16,1], index: 2, kind: input, shape index: {}]   ;;  %s2522_s3 = inlined_call_operand.vmem [shape: f32[2,1,32], index: 3, kind: input, shape index: {}]   ;;  %s2523_s4 = inlined_call_operand.vmem [shape: f32[2,65,33], index: 4, kind: input, shape index: {}]   ;;  %s2524_s5 = inlined_call_operand.vmem [shape: f32[2,16,32], index: 5, kind: input, shape index: {}]   ;;  %s2525_s6 = inlined_call_operand.vmem [shape: f32[64,32], index: 6, kind: input, shape index: {}]   ;;  %s2526_s7 = inlined_call_operand.vmem [shape: f32[1,32], index: 7, kind: input, shape index: {}]   ;;  %s2527_s8 = inlined_call_operand.hbm [shape: f32[2,16,32], index: 8, kind: output, shape index: {}]  }
   0x1   :  { %v69_v0 = vld [vmem:[%s2519_s0] sm:$0xff]  ;;  %v70_v1 = vld [vmem:[%s2519_s0 + $0x8] sm:$0xff]  ;;  %v71_v5 = vld [vmem:[%s2519_s0 + $0x10] sm:$0xff]  ;;  %1914 = vset.pattern.permute.xlu1 %v1995_v7  ;;  %1913 = vset.pattern.permute.xlu0 %v1995_v7 }
   0x2   :  { %v73_v2 = vld [vmem:[%s2523_s4] sm:$0xff]  ;;  %v74_v3 = vld [vmem:[%s2523_s4 + $0x8] sm:$0xff]  ;;  %v72_v6 = vld [vmem:[%s2519_s0 + $0x18] sm:$0xff] }
   0x3   :  { %v81_v4 = vmul.f32 %v73_v2, %v69_v0  ;;  %v82_v8 = vmul.f32 %v74_v3, %v70_v1  ;;  %v89_v9 = vmul.f32 %v73_v2, %v71_v5  ;;  %v90_v10 = vmul.f32 %v74_v3, %v72_v6  ;;  %v75_v11 = vld [vmem:[%s2523_s4 + $0x10] sm:$0xff]  ;;  %v76_v12 = vld [vmem:[%s2523_s4 + $0x18] sm:$0xff]  ;;  %v77_v13 = vld [vmem:[%s2523_s4 + $0x20] sm:$0xff] }
   0x4   :  { %v83_v14 = vmul.f32 %v75_v11, %v69_v0  ;;  %v84_v15 = vmul.f32 %v76_v12, %v70_v1  ;;  %v91_v16 = vmul.f32 %v75_v11, %v71_v5  ;;  %v92_v17 = vmul.f32 %v76_v12, %v72_v6  ;;  %v78_v18 = vld [vmem:[%s2523_s4 + $0x28] sm:$0xff]  ;;  %v79_v23 = vld [vmem:[%s2523_s4 + $0x30] sm:$0xff]  ;;  %v80_v24 = vld [vmem:[%s2523_s4 + $0x38] sm:$0xff] }
   0x5   :  { %v1774_v19 = vpack.c.bf16 %v82_v8, %v81_v4  ;;  %v1790_v20 = vpack.c.bf16 %v90_v10, %v89_v9  ;;  %v85_v21 = vmul.f32 %v77_v13, %v69_v0  ;;  %v86_v22 = vmul.f32 %v78_v18, %v70_v1  ;;  %v2088_v25 = vld [vmem:[%s2520_s1] sm:$0xff]  ;;  %v64_v37 = vld [vmem:[%s2521_s2 + $0x8] sm:$0xff] }
   0x6   :  { %v1778_v26 = vpack.c.bf16 %v84_v15, %v83_v14  ;;  %v1794_v27 = vpack.c.bf16 %v92_v17, %v91_v16  ;;  %v93_v28 = vmul.f32 %v77_v13, %v71_v5  ;;  %v94_v29 = vmul.f32 %v78_v18, %v72_v6  ;;  %1600 = vmatprep.mubr.msk.f32.mxu0 %vm97_vm0, %v2088_v25  ;;  %v2095_v30 = vld [vmem:[%s2520_s1 + $0x80] sm:$0xff] }
   0x7   :  { %1775 = vmatprep.subr.bf16.mxu0 %v1774_v19  ;;  %1791 = vmatprep.subr.bf16.mxu1 %v1790_v20  ;;  %v1782_v31 = vpack.c.bf16 %v86_v22, %v85_v21  ;;  %v87_v32 = vmul.f32 %v79_v23, %v69_v0  ;;  %v88_v33 = vmul.f32 %v80_v24, %v70_v1  ;;  %v63_v38 = vld [vmem:[%s2521_s2] sm:$0xff] }
   0x8   :  { %1777 = vmatpush3.bf16.msra.mxu0 %v1774_v19  ;;  %1793 = vmatpush3.bf16.msra.mxu1 %v1790_v20  ;;  %v1798_v34 = vpack.c.bf16 %v94_v29, %v93_v28  ;;  %v95_v35 = vmul.f32 %v79_v23, %v71_v5  ;;  %v96_v36 = vmul.f32 %v80_v24, %v72_v6 }
   0x9   :  { %1779 = vmatprep.subr.bf16.mxu0 %v1778_v26  ;;  %1795 = vmatprep.subr.bf16.mxu1 %v1794_v27 }
   0xa   :  { %1628 = vmatprep.mubr.msk.f32.mxu1 %vm97_vm0, %v2095_v30  ;;  %384 = vperm.xlu1 %1914, %v64_v37  }
   0xb   :  { %379 = vperm.xlu0 %1913, %v63_v38  }
   0xc   :  { %13 = vsyncpa [#allocation3], 0  ;;  %1781 = vmatpush3.bf16.msra.mxu0 %v1778_v26  ;;  %1797 = vmatpush3.bf16.msra.mxu1 %v1794_v27  ;;  %v66_v39 = vld [vmem:[%s2521_s2 + $0x18] sm:$0xff]  ;;  %v65_v40 = vld [vmem:[%s2521_s2 + $0x10] sm:$0xff]  ;;  %v1786_v41 = vpack.c.bf16 %v88_v33, %v87_v32  ;;  %v1802_v42 = vpack.c.bf16 %v96_v36, %v95_v35  ;;  %v1996_v59 = vmov 32   ;;  %vm999_vm1 = vcmask 261120  }
   0xd   :  { %1783 = vmatprep.subr.bf16.mxu0 %v1782_v31  ;;  %1799 = vmatprep.subr.bf16.mxu1 %v1798_v34  ;;  %v2114_v43 = vld [vmem:[%s2520_s1 + $0x8] sm:$0xff]  ;;  %v2124_v45 = vld [vmem:[%s2520_s1 + $0x10] sm:$0xff]  ;;  %v2142_v47 = vld [vmem:[%s2520_s1 + $0x18] sm:$0xff]  ;;  %vm1028_vm2 = vcmask 7168   ;;  %vm1037_vm3 = vcmask 15360  }
   0xe   :  { %394 = vperm.xlu1 %1914, %v66_v39   ;;  %v2119_v44 = vld [vmem:[%s2520_s1 + $0x88] sm:$0xff]  ;;  %v2129_v46 = vld [vmem:[%s2520_s1 + $0x90] sm:$0xff]  ;;  %v2147_v48 = vld [vmem:[%s2520_s1 + $0x98] sm:$0xff] }
   0xf   :  { %389 = vperm.xlu0 %1913, %v65_v40   ;;  %v2152_v49 = vld [vmem:[%s2520_s1 + $0x20] sm:$0xff]  ;;  %v2170_v51 = vld [vmem:[%s2520_s1 + $0x28] sm:$0xff]  ;;  %v2180_v53 = vld [vmem:[%s2520_s1 + $0x30] sm:$0xff] }
  0x10   :  { %1785 = vmatpush3.bf16.msra.mxu0 %v1782_v31  ;;  %1801 = vmatpush3.bf16.msra.mxu1 %v1798_v34  ;;  %v2157_v50 = vld [vmem:[%s2520_s1 + $0xa0] sm:$0xff]  ;;  %v2175_v52 = vld [vmem:[%s2520_s1 + $0xa8] sm:$0xff]  ;;  %v2185_v54 = vld [vmem:[%s2520_s1 + $0xb0] sm:$0xff] }
  0x11   :  { %1787 = vmatprep.subr.bf16.mxu0 %v1786_v41  ;;  %1803 = vmatprep.subr.bf16.mxu1 %v1802_v42  ;;  %v2198_v55 = vld [vmem:[%s2520_s1 + $0x38] sm:$0xff]  ;;  %v1394_v57 = vld [vmem:[%s2520_s1 + $0x40] sm:$0xff] }
  0x12   :  { %v2203_v56 = vld [vmem:[%s2520_s1 + $0xb8] sm:$0xff]  ;;  %v1402_v58 = vld [vmem:[%s2520_s1 + $0xc0] sm:$0xff]  ;;  %1915 = vset.pattern.permute.xlu1 %v1996_v59 }
  0x13   :  { %1916 = vset.pattern.permute.xlu0 %v1996_v59  ;;  %v1426_v27 = vld [vmem:[%s2523_s4 + $0x40] ss:$0 sm:$0xff] }
  0x14   :  { %1789 = vmatpush3.bf16.msra.mxu0 %v1786_v41  ;;  %1805 = vmatpush3.bf16.msra.mxu1 %v1802_v42 }
  0x17   :  { %1601 = vmatmul.mubr.msk.f32.vlgmr.msra.gmra.mrb[0].mxu0 %vm97_vm0, %v2114_v43  ;;  %1629 = vmatmul.mubr.msk.f32.vlgmr.msra.gmra.mrb[0].mxu1 %vm97_vm0, %v2119_v44 }
  0x18   :  { %1603 = vmatprep.mubr.msk.f32.mxu0 %vm97_vm0, %v2124_v45  ;;  %1631 = vmatprep.mubr.msk.f32.mxu1 %vm97_vm0, %v2129_v46 }
  0x1b   :  { %1604 = vmatmul.mubr.msk.f32.gmra.mrb[2].mxu0 %vm97_vm0, %v2142_v47  ;;  %1632 = vmatmul.mubr.msk.f32.gmra.mrb[2].mxu1 %vm97_vm0, %v2147_v48 }
  0x1c   :  { %1606 = vmatprep.mubr.msk.f32.mxu0 %vm97_vm0, %v2152_v49  ;;  %1634 = vmatprep.mubr.msk.f32.mxu1 %vm97_vm0, %v2157_v50 }
  0x1f   :  { %1607 = vmatmul.mubr.msk.f32.gmra.mrb[4].mxu0 %vm97_vm0, %v2170_v51  ;;  %1635 = vmatmul.mubr.msk.f32.gmra.mrb[4].mxu1 %vm97_vm0, %v2175_v52 }
  0x20   :  { %1609 = vmatprep.mubr.msk.f32.mxu0 %vm97_vm0, %v2180_v53  ;;  %1637 = vmatprep.mubr.msk.f32.mxu1 %vm97_vm0, %v2185_v54 }
  0x23   :  { %1610 = vmatmul.mubr.msk.f32.gmra.mrb[6].mxu0 %vm97_vm0, %v2198_v55  ;;  %1638 = vmatmul.mubr.msk.f32.gmra.mrb[6].mxu1 %vm97_vm0, %v2203_v56 }
  0x24   :  { %1656 = vmatprep.mubr.msk.f32.mxu0 %vm97_vm0, %v1394_v57  ;;  %1684 = vmatprep.mubr.msk.f32.mxu1 %vm97_vm0, %v1402_v58 }
  0x89   :  { %v2217_v13 = vpop.permute.xlu1 %384 }
  0x8a   :  { %v2219_v14 = vpop.permute.xlu0 %379 }
  0x8d   :  { %v2224_v38 = vpop.permute.xlu1 %394 }
  0x8e   :  { %v2226_v41 = vpop.permute.xlu0 %389 }
  0xea   :  { %v1602_v60 = vpop.f32.mrb[0].mxu0  ;;  %v1630_v61 = vpop.f32.mrb[0].mxu1 }
  0xeb   :  { %v188_v62 = vpop.f32.mrb[1].mxu0  ;;  %v317_v63 = vpop.f32.mrb[1].mxu1 }
  0xec   :  { %v1806_v0 = vpack.c.bf16 %v1602_v60, %v188_v62  ;;  %v1822_v1 = vpack.c.bf16 %v1630_v61, %v317_v63 }
  0xee   :  { %v1605_v2 = vpop.f32.mrb[2].mxu0  ;;  %v1633_v3 = vpop.f32.mrb[2].mxu1  ;;  %1807 = vmatprep.subr.bf16.mxu0 %v1806_v0  ;;  %1823 = vmatprep.subr.bf16.mxu1 %v1822_v1 }
  0xef   :  { %v357_v4 = vadd.f32 %v1605_v2, %v1602_v60  ;;  %v359_v5 = vadd.f32 %v1633_v3, %v1630_v61  ;;  %v198_v6 = vpop.f32.mrb[3].mxu0  ;;  %v327_v8 = vpop.f32.mrb[3].mxu1  ;;  %1809 = vmatpush3.bf16.msra.mxu0 %v1806_v0  ;;  %1825 = vmatpush3.bf16.msra.mxu1 %v1822_v1  ;;  %v1395_v60 = vld [vmem:[%s2520_s1 + $0x48] sm:$0xff]  ;;  %v1404_v0 = vld [vmem:[%s2520_s1 + $0xd0] sm:$0xff] }
  0xf0   :  { %v356_v9 = vadd.f32 %v198_v6, %v188_v62  ;;  %v1810_v10 = vpack.c.bf16 %v1605_v2, %v198_v6  ;;  %v358_v11 = vadd.f32 %v327_v8, %v317_v63  ;;  %v1826_v12 = vpack.c.bf16 %v1633_v3, %v327_v8  ;;  %v1403_v61 = vld [vmem:[%s2520_s1 + $0xc8] sm:$0xff]  ;;  %v1396_v63 = vld [vmem:[%s2520_s1 + $0x50] sm:$0xff]  ;;  %v1405_v6 = vld [vmem:[%s2520_s1 + $0xd8] sm:$0xff] }
  0xf1   :  { %v1398_v8 = vld [vmem:[%s2520_s1 + $0x60] sm:$0xff] }
  0xf2   :  { %v1608_v15 = vpop.f32.mrb[4].mxu0  ;;  %v1636_v16 = vpop.f32.mrb[4].mxu1  ;;  %1811 = vmatprep.subr.bf16.mxu0 %v1810_v10  ;;  %1827 = vmatprep.subr.bf16.mxu1 %v1826_v12 }
  0xf3   :  { %v361_v17 = vadd.f32 %v1608_v15, %v357_v4  ;;  %v363_v18 = vadd.f32 %v1636_v16, %v359_v5  ;;  %v208_v19 = vpop.f32.mrb[5].mxu0  ;;  %v337_v20 = vpop.f32.mrb[5].mxu1  ;;  %1813 = vmatpush3.bf16.msra.mxu0 %v1810_v10  ;;  %1829 = vmatpush3.bf16.msra.mxu1 %v1826_v12  ;;  %v1397_v5 = vld [vmem:[%s2520_s1 + $0x58] sm:$0xff]  ;;  %v1407_v12 = vld [vmem:[%s2520_s1 + $0xe8] sm:$0xff] }
  0xf4   :  { %v360_v21 = vadd.f32 %v356_v9, %v208_v19  ;;  %v1814_v22 = vpack.c.bf16 %v1608_v15, %v208_v19  ;;  %v362_v23 = vadd.f32 %v358_v11, %v337_v20  ;;  %v1830_v24 = vpack.c.bf16 %v1636_v16, %v337_v20  ;;  %v1406_v9 = vld [vmem:[%s2520_s1 + $0xe0] sm:$0xff]  ;;  %v1399_v11 = vld [vmem:[%s2520_s1 + $0x68] sm:$0xff]  ;;  %v1400_v15 = vld [vmem:[%s2520_s1 + $0x70] sm:$0xff] }
  0xf5   :  { %v1408_v16 = vld [vmem:[%s2520_s1 + $0xf0] sm:$0xff] }
  0xf6   :  { %v1611_v26 = vpop.f32.mrb[6].mxu0  ;;  %v1639_v28 = vpop.f32.mrb[6].mxu1  ;;  %1815 = vmatprep.subr.bf16.mxu0 %v1814_v22  ;;  %1831 = vmatprep.subr.bf16.mxu1 %v1830_v24 }
  0xf7   :  { %v365_v29 = vadd.f32 %v1611_v26, %v361_v17  ;;  %v367_v31 = vadd.f32 %v1639_v28, %v363_v18  ;;  %v218_v32 = vpop.f32.mrb[7].mxu0  ;;  %v347_v33 = vpop.f32.mrb[7].mxu1  ;;  %1817 = vmatpush3.bf16.msra.mxu0 %v1814_v22  ;;  %1833 = vmatpush3.bf16.msra.mxu1 %v1830_v24  ;;  %v1409_v17 = vld [vmem:[%s2520_s1 + $0xf8] sm:$0xff]  ;;  %v1443_v24 = vld [vmem:[%s2523_s4 + $0x48] sm:$0xff] }
  0xf8   :  { %v364_v34 = vadd.f32 %v360_v21, %v218_v32  ;;  %v1818_v35 = vpack.c.bf16 %v1611_v26, %v218_v32  ;;  %v366_v36 = vadd.f32 %v362_v23, %v347_v33  ;;  %v1834_v37 = vpack.c.bf16 %v1639_v28, %v347_v33  ;;  %v1401_v18 = vld [vmem:[%s2520_s1 + $0x78] sm:$0xff]  ;;  %v1444_v23 = vld [vmem:[%s2523_s4 + $0x50] sm:$0xff]  ;;  %v1446_v33 = vld [vmem:[%s2523_s4 + $0x60] sm:$0xff] }
  0xf9   :  { %v374_v39 = vmul.f32 %v1426_v27, %v365_v29  ;;  %v376_v40 = vmul.f32 %v1426_v27, %v367_v31 }
  0xfa   :  { %v373_v42 = vmul.f32 %v1426_v27, %v364_v34  ;;  %1819 = vmatprep.subr.bf16.mxu0 %v1818_v35  ;;  %1835 = vmatprep.subr.bf16.mxu1 %v1834_v37  ;;  %v375_v57 = vmul.f32 %v1426_v27, %v366_v36  ;;  %v1445_v34 = vld [vmem:[%s2523_s4 + $0x58] sm:$0xff] }
  0xfb   :  { %v2229_v58 = vmul.f32 %v2217_v13, %v374_v39  ;;  %v2232_v59 = vmul.f32 %v2224_v38, %v376_v40  ;;  %1821 = vmatpush3.bf16.msra.mxu0 %v1818_v35  ;;  %1837 = vmatpush3.bf16.msra.mxu1 %v1834_v37 }
  0xfc   :  { %v2241_v62 = vmul.f32 %v2226_v41, %v375_v57  ;;  %v2251_v2 = vmul.f32 %v2219_v14, %v373_v42 }
  0xfd   :  { %v402_v1 = vadd.f32 1e-20, %v2229_v58  ;;  %v404_v3 = vadd.f32 1e-20, %v2232_v59 }
  0xfe   :  { %1657 = vmatmul.mubr.msk.f32.vlgmr.msra.gmra.mrb[8].mxu0 %vm97_vm0, %v1395_v60  ;;  %1685 = vmatmul.mubr.msk.f32.vlgmr.msra.gmra.mrb[8].mxu1 %vm97_vm0, %v1403_v61  ;;  %v403_v4 = vadd.f32 1e-20, %v2241_v62  ;;  %v401_v10 = vadd.f32 1e-20, %v2251_v2 }
  0xff   :  { %1923 = vrcp.f32 %v402_v1  ;;  %1659 = vmatprep.mubr.msk.f32.mxu0 %vm97_vm0, %v1396_v63  ;;  %1687 = vmatprep.mubr.msk.f32.mxu1 %vm97_vm0, %v1404_v0  ;;  %v1448_v0 = vld [vmem:[%s2523_s4 + $0x70] sm:$0xff]  ;;  %v1447_v1 = vld [vmem:[%s2523_s4 + $0x68] sm:$0xff] }
 0x100   :  { %1925 = vrcp.f32 %v404_v3 }
 0x101   :  { %1927 = vrcp.f32 %v403_v4 }
 0x102   :  { %1660 = vmatmul.mubr.msk.f32.gmra.mrb[10].mxu0 %vm97_vm0, %v1397_v5  ;;  %1688 = vmatmul.mubr.msk.f32.gmra.mrb[10].mxu1 %vm97_vm0, %v1405_v6  ;;  %1929 = vrcp.f32 %v401_v10 }
 0x103   :  { %1662 = vmatprep.mubr.msk.f32.mxu0 %vm97_vm0, %v1398_v8  ;;  %1690 = vmatprep.mubr.msk.f32.mxu1 %vm97_vm0, %v1406_v9 }
 0x106   :  { %1663 = vmatmul.mubr.msk.f32.gmra.mrb[12].mxu0 %vm97_vm0, %v1399_v11  ;;  %1691 = vmatmul.mubr.msk.f32.gmra.mrb[12].mxu1 %vm97_vm0, %v1407_v12 }
 0x107   :  { %1665 = vmatprep.mubr.msk.f32.mxu0 %vm97_vm0, %v1400_v15  ;;  %1693 = vmatprep.mubr.msk.f32.mxu1 %vm97_vm0, %v1408_v16  ;;  %v1450_v16 = vld [vmem:[%s2523_s4 + $0x80] sm:$0xff] }
 0x109   :  { %v1924_v19 = vpop.eup %1923 }
 0x10a   :  { %1694 = vmatmul.mubr.msk.f32.gmra.mrb[14].mxu1 %vm97_vm0, %v1409_v17  ;;  %416 = vperm.xlu1 %1915, %v1924_v19   ;;  %v1926_v20 = vpop.eup %1925  ;;  %v1449_v17 = vld [vmem:[%s2523_s4 + $0x78] sm:$0xff] }
 0x10b   :  { %1666 = vmatmul.mubr.msk.f32.gmra.mrb[14].mxu0 %vm97_vm0, %v1401_v18  ;;  %1740 = vmatprep.mubr.msk.f32.mxu1 %vm97_vm0, %v2095_v30  ;;  %v1928_v21 = vpop.eup %1927 }
 0x10c   :  { %426 = vperm.xlu0 %1916, %v1926_v20   ;;  %1712 = vmatprep.mubr.msk.f32.mxu0 %vm97_vm0, %v2088_v25  ;;  %v1930_v22 = vpop.eup %1929 }
 0x10e   :  { %421 = vperm.xlu1 %1915, %v1928_v21  }
 0x110   :  { %411 = vperm.xlu0 %1916, %v1930_v22  }
 0x1d1   :  { %v1658_v26 = vpop.f32.mrb[8].mxu0  ;;  %v1686_v27 = vpop.f32.mrb[8].mxu1 }
 0x1d2   :  { %v701_v28 = vmul.f32 %v1658_v26, %v1444_v23  ;;  %v709_v30 = vmul.f32 %v1686_v27, %v1444_v23  ;;  %v523_v29 = vpop.f32.mrb[9].mxu0  ;;  %v652_v31 = vpop.f32.mrb[9].mxu1 }
 0x1d3   :  { %v700_v32 = vmul.f32 %v1443_v24, %v523_v29  ;;  %v708_v25 = vmul.f32 %v1443_v24, %v652_v31 }
 0x1d5   :  { %v1838_v35 = vpack.c.bf16 %v701_v28, %v700_v32  ;;  %v1854_v36 = vpack.c.bf16 %v709_v30, %v708_v25  ;;  %v1661_v37 = vpop.f32.mrb[10].mxu0  ;;  %v1689_v39 = vpop.f32.mrb[10].mxu1 }
 0x1d6   :  { %v703_v40 = vmul.f32 %v1661_v37, %v1446_v33  ;;  %v711_v42 = vmul.f32 %v1689_v39, %v1446_v33  ;;  %v533_v57 = vpop.f32.mrb[11].mxu0  ;;  %v662_v60 = vpop.f32.mrb[11].mxu1  ;;  %v1470_v39 = vld [vmem:[%s2522_s3 + $0x1] ss:$0 sm:$0xff] }
 0x1d7   :  { %v702_v61 = vmul.f32 %v1445_v34, %v533_v57  ;;  %v710_v63 = vmul.f32 %v1445_v34, %v662_v60  ;;  %1839 = vmatprep.subr.bf16.mxu0 %v1838_v35  ;;  %1855 = vmatprep.subr.bf16.mxu1 %v1854_v36  ;;  %v1469_v60 = vld [vmem:[%s2522_s3] ss:$0 sm:$0xff] }
 0x1d8   :  { %1841 = vmatpush3.bf16.msra.mxu0 %v1838_v35  ;;  %1857 = vmatpush3.bf16.msra.mxu1 %v1854_v36 }
 0x1d9   :  { %v1842_v3 = vpack.c.bf16 %v703_v40, %v702_v61  ;;  %v1858_v4 = vpack.c.bf16 %v711_v42, %v710_v63  ;;  %v1664_v5 = vpop.f32.mrb[12].mxu0  ;;  %v1692_v6 = vpop.f32.mrb[12].mxu1 }
 0x1da   :  { %v705_v8 = vmul.f32 %v1664_v5, %v1448_v0  ;;  %v713_v9 = vmul.f32 %v1692_v6, %v1448_v0  ;;  %v543_v10 = vpop.f32.mrb[13].mxu0  ;;  %v672_v11 = vpop.f32.mrb[13].mxu1 }
 0x1db   :  { %v704_v12 = vmul.f32 %v1447_v1, %v543_v10  ;;  %v712_v15 = vmul.f32 %v1447_v1, %v672_v11  ;;  %1843 = vmatprep.subr.bf16.mxu0 %v1842_v3  ;;  %1859 = vmatprep.subr.bf16.mxu1 %v1858_v4 }
 0x1dc   :  { %1845 = vmatpush3.bf16.msra.mxu0 %v1842_v3  ;;  %1861 = vmatpush3.bf16.msra.mxu1 %v1858_v4 }
 0x1dd   :  { %v1846_v18 = vpack.c.bf16 %v705_v8, %v704_v12  ;;  %v1862_v19 = vpack.c.bf16 %v713_v9, %v712_v15  ;;  %v1695_v20 = vpop.f32.mrb[14].mxu1 }
 0x1de   :  { %v1667_v21 = vpop.f32.mrb[14].mxu0  ;;  %v715_v22 = vmul.f32 %v1695_v20, %v1450_v16  ;;  %v682_v23 = vpop.f32.mrb[15].mxu1 }
 0x1df   :  { %v707_v24 = vmul.f32 %v1667_v21, %v1450_v16  ;;  %v553_v26 = vpop.f32.mrb[15].mxu0  ;;  %v714_v27 = vmul.f32 %v1449_v17, %v682_v23  ;;  %1847 = vmatprep.subr.bf16.mxu0 %v1846_v18  ;;  %1863 = vmatprep.subr.bf16.mxu1 %v1862_v19 }
 0x1e0   :  { %v706_v28 = vmul.f32 %v1449_v17, %v553_v26  ;;  %1849 = vmatpush3.bf16.msra.mxu0 %v1846_v18  ;;  %1865 = vmatpush3.bf16.msra.mxu1 %v1862_v19 }
 0x1e1   :  { %v1866_v30 = vpack.c.bf16 %v715_v22, %v714_v27 }
 0x1e2   :  { %v1850_v29 = vpack.c.bf16 %v707_v24, %v706_v28 }
 0x1e3   :  { %1867 = vmatprep.subr.bf16.mxu1 %v1866_v30 }
 0x1e4   :  { %1851 = vmatprep.subr.bf16.mxu0 %v1850_v29  ;;  %1869 = vmatpush3.bf16.msra.mxu1 %v1866_v30 }
 0x1e5   :  { %1853 = vmatpush3.bf16.msra.mxu0 %v1850_v29 }
 0x1e7   :  { %1741 = vmatmul.mubr.msk.f32.vlgmr.msra.gmra.mrb[16].mxu1 %vm97_vm0, %v2119_v44 }
 0x1e8   :  { %1713 = vmatmul.mubr.msk.f32.vlgmr.msra.gmra.mrb[16].mxu0 %vm97_vm0, %v2114_v43  ;;  %1743 = vmatprep.mubr.msk.f32.mxu1 %vm97_vm0, %v2129_v46  ;;  %v1468_v43 = vld [vmem:[%s2523_s4 + $0x88] ss:$0 sm:$0xff] }
 0x1e9   :  { %1715 = vmatprep.mubr.msk.f32.mxu0 %vm97_vm0, %v2124_v45 }
 0x1ef   :  { %1744 = vmatmul.mubr.msk.f32.gmra.mrb[16].mxu1 %vm97_vm0, %v2147_v48 }
 0x1f0   :  { %1716 = vmatmul.mubr.msk.f32.gmra.mrb[16].mxu0 %vm97_vm0, %v2142_v47  ;;  %1746 = vmatprep.mubr.msk.f32.mxu1 %vm97_vm0, %v2157_v50 }
 0x1f1   :  { %1718 = vmatprep.mubr.msk.f32.mxu0 %vm97_vm0, %v2152_v49 }
 0x1f7   :  { %1747 = vmatmul.mubr.msk.f32.gmra.mrb[16].mxu1 %vm97_vm0, %v2175_v52 }
 0x1f8   :  { %1719 = vmatmul.mubr.msk.f32.gmra.mrb[16].mxu0 %vm97_vm0, %v2170_v51  ;;  %1749 = vmatprep.mubr.msk.f32.mxu1 %vm97_vm0, %v2185_v54 }
 0x1f9   :  { %1721 = vmatprep.mubr.msk.f32.mxu0 %vm97_vm0, %v2180_v53 }
 0x1ff   :  { %1750 = vmatmul.mubr.msk.f32.gmra.mrb[16].mxu1 %vm97_vm0, %v2203_v56 }
 0x200   :  { %1722 = vmatmul.mubr.msk.f32.gmra.mrb[16].mxu0 %vm97_vm0, %v2198_v55 }
 0x2d2   :  { %v1751_v44 = vpop.f32.mrb[16].mxu1 }
 0x2d3   :  { %v1723_v45 = vpop.f32.mrb[16].mxu0  ;;  %v917_v46 = vpop.f32.mrb[17].mxu1  ;;  %v946_v48 = vmul.f32 %v1751_v44, %v1468_v43 }
 0x2d4   :  { %v944_v47 = vmul.f32 %v1723_v45, %v1468_v43  ;;  %v812_v49 = vpop.f32.mrb[17].mxu0  ;;  %v945_v50 = vmul.f32 %v1468_v43, %v917_v46 }
 0x2d5   :  { %v943_v51 = vmul.f32 %v1468_v43, %v812_v49  ;;  %v950_v55 = vmul.f32 %v946_v48, %v2224_v38 }
 0x2d6   :  { %v949_v52 = vmul.f32 %v945_v50, %v2226_v41  ;;  %v948_v53 = vmul.f32 %v944_v47, %v2217_v13  ;;  %v417_v13 = vpop.permute.xlu1 %416 }
 0x2d7   :  { %v947_v54 = vmul.f32 %v943_v51, %v2219_v14  ;;  %v954_v25 = vadd.f32 1e-20, %v950_v55  ;;  %v427_v14 = vpop.permute.xlu0 %426  ;;  %v2372_v40 = vmul.f32 %v417_v13, %v2229_v58 }
 0x2d8   :  { %v953_v56 = vadd.f32 1e-20, %v949_v52  ;;  %v952_v32 = vadd.f32 1e-20, %v948_v53 }
 0x2d9   :  { %v951_v31 = vadd.f32 1e-20, %v947_v54  ;;  %v996_v63 = vmul.f32 %v1469_v60, %v2372_v40 }
 0x2da   :  { %v422_v38 = vpop.permute.xlu1 %421 }
 0x2db   :  { %1931 = vrcp.f32 %v951_v31  ;;  %v2366_v36 = vmul.f32 %v422_v38, %v2241_v62  ;;  %v412_v37 = vpop.permute.xlu0 %411  ;;  %v2382_v62 = vmul.f32 %v427_v14, %v2232_v59 }
 0x2dc   :  { %1933 = vrcp.f32 %v953_v56  ;;  %v2375_v42 = vmul.f32 %v412_v37, %v2251_v2  ;;  %v1003_v2 = vsel %vm999_vm1, %v996_v63, 0.0 }
 0x2dd   :  { %1935 = vrcp.f32 %v952_v32  ;;  %v997_v57 = vmul.f32 %v1470_v39, %v2366_v36  ;;  %v998_v1 = vmul.f32 %v1470_v39, %v2382_v62 }
 0x2de   :  { %1937 = vrcp.f32 %v954_v25  ;;  %v995_v58 = vmul.f32 %v1469_v60, %v2375_v42 }
 0x2df   :  { %v1006_v61 = vsel %vm999_vm1, %v997_v57, 0.0  ;;  %v1009_v3 = vsel %vm999_vm1, %v998_v1, 0.0 }
 0x2e0   :  { %v1000_v0 = vsel %vm999_vm1, %v995_v58, 0.0 }
 0x2e5   :  { %v1932_v33 = vpop.eup %1931 }
 0x2e6   :  { %v1934_v34 = vpop.eup %1933  ;;  %961 = vperm.xlu1 %1915, %v1932_v33  }
 0x2e7   :  { %971 = vperm.xlu0 %1916, %v1934_v34   ;;  %v1936_v35 = vpop.eup %1935 }
 0x2e8   :  { %v1938_v41 = vpop.eup %1937 }
 0x2ea   :  { %966 = vperm.xlu1 %1915, %v1936_v35  }
 0x2eb   :  { %976 = vperm.xlu0 %1916, %v1938_v41  }
 0x2ee   :  { %1918 = vset.pattern.permute.xlu1 %v1995_v7 }
 0x2ef   :  { %1917 = vset.pattern.permute.xlu0 %v1995_v7 }
 0x30a   :  { %1007 = vadd.xlane.f32.xlu0 %v1006_v61 }
 0x30e   :  { %1004 = vadd.xlane.f32.xlu0 %v1003_v2  ;;  %1001 = vadd.xlane.f32.xlu1 %v1000_v0 }
 0x312   :  { %1010 = vadd.xlane.f32.xlu1 %v1009_v3 }
 0x365   :  { %v962_v59 = vpop.permute.xlu1 %961 }
 0x366   :  { %v2391_v4 = vmul.f32 %v962_v59, %v947_v54  ;;  %v972_v5 = vpop.permute.xlu0 %971 }
 0x367   :  { %v2393_v6 = vmul.f32 %v972_v5, %v949_v52 }
 0x368   :  { %v1012_v8 = vmul.f32 %v1469_v60, %v2391_v4 }
 0x369   :  { %v967_v9 = vpop.permute.xlu1 %966  ;;  %v1014_v10 = vmul.f32 %v1470_v39, %v2393_v6 }
 0x36a   :  { %v2397_v11 = vmul.f32 %v967_v9, %v948_v53  ;;  %v977_v12 = vpop.permute.xlu0 %976  ;;  %v1016_v15 = vsel %vm999_vm1, %v1012_v8, 0.0 }
 0x36b   :  { %v2400_v16 = vmul.f32 %v977_v12, %v950_v55  ;;  %1017 = vadd.xlane.f32.xlu0 %v1016_v15  ;;  %v1022_v17 = vsel %vm999_vm1, %v1014_v10, 0.0  ;;  %v1997_v15 = vmov 1  }
 0x36c   :  { %1023 = vadd.xlane.f32.xlu1 %v1022_v17  ;;  %v1013_v18 = vmul.f32 %v1469_v60, %v2397_v11 }
 0x36d   :  { %v1015_v19 = vmul.f32 %v1470_v39, %v2400_v16 }
 0x36e   :  { %v1019_v20 = vsel %vm999_vm1, %v1013_v18, 0.0 }
 0x36f   :  { %1020 = vadd.xlane.f32.xlu0 %v1019_v20  ;;  %v1025_v21 = vsel %vm999_vm1, %v1015_v19, 0.0  ;;  %v1154_v20 = vld [vmem:[%s2525_s6] sm:$0xff] }
 0x370   :  { %1026 = vadd.xlane.f32.xlu1 %v1025_v21  ;;  %v1155_v21 = vld [vmem:[%s2525_s6 + $0x8] sm:$0xff] }
 0x397   :  { %v1008_v22 = vpop.xlane.xlu0 %1007 }
 0x39b   :  { %v1002_v23 = vpop.xlane.xlu1 %1001  ;;  %v1005_v24 = vpop.xlane.xlu0 %1004 }
 0x39f   :  { %v1011_v26 = vpop.xlane.xlu1 %1010 }
 0x3f8   :  { %v1018_v27 = vpop.xlane.xlu0 %1017 }
 0x3f9   :  { %v1024_v28 = vpop.xlane.xlu1 %1023  ;;  %v1029_v30 = vsel %vm1028_vm2, %v1002_v23, %v1018_v27  ;;  %v1870_v23 = vpack.c.bf16 %v1155_v21, %v1154_v20  ;;  %v1159_v27 = vld [vmem:[%s2525_s6 + $0x28] sm:$0xff] }
 0x3fa   :  { %v1031_v29 = vsel %vm1028_vm2, %v1008_v22, %v1024_v28  ;;  %v1033_v43 = vmul.f32 0.17677669, %v1029_v30  ;;  %v1156_v22 = vld [vmem:[%s2525_s6 + $0x10] sm:$0xff] }
 0x3fb   :  { %v1035_v44 = vmul.f32 0.17677669, %v1031_v29  ;;  %1871 = vmatprep.subr.bf16.mxu0 %v1870_v23  ;;  %1886 = vmatprep.subr.bf16.mxu1 %v1870_v23 }
 0x3fc   :  { %v1021_v45 = vpop.xlane.xlu0 %1020  ;;  %v1038_v46 = vsel %vm1037_vm3, %v1033_v43, -inf  ;;  %1873 = vmatpush3.bf16.msra.mxu0 %v1870_v23  ;;  %1890 = vmatpush3.bf16.msra.mxu1 %v1870_v23 }
 0x3fd   :  { %v1027_v47 = vpop.xlane.xlu1 %1026  ;;  %v1030_v48 = vsel %vm1028_vm2, %v1005_v24, %v1021_v45  ;;  %v1044_v49 = vsel %vm1037_vm3, %v1035_v44, -inf  ;;  %1039 = vmax.xlane.f32.xlu0 %v1038_v46  ;;  %v1161_v45 = vld [vmem:[%s2525_s6 + $0x38] sm:$0xff] }
 0x3fe   :  { %v1032_v50 = vsel %vm1028_vm2, %v1011_v26, %v1027_v47  ;;  %v1034_v51 = vmul.f32 0.17677669, %v1030_v48  ;;  %1045 = vmax.xlane.f32.xlu1 %v1044_v49  ;;  %v1158_v26 = vld [vmem:[%s2525_s6 + $0x20] sm:$0xff] }
 0x3ff   :  { %v1036_v52 = vmul.f32 0.17677669, %v1032_v50  ;;  %v1878_v28 = vpack.c.bf16 %v1159_v27, %v1158_v26 }
 0x400   :  { %v1041_v53 = vsel %vm1037_vm3, %v1034_v51, -inf }
 0x401   :  { %v1047_v54 = vsel %vm1037_vm3, %v1036_v52, -inf  ;;  %1042 = vmax.xlane.f32.xlu0 %v1041_v53 }
 0x402   :  { %1048 = vmax.xlane.f32.xlu1 %v1047_v54 }
 0x48a   :  { %v1040_v55 = vpop.xlane.xlu0 %1039 }
 0x48b   :  { %v1046_v56 = vpop.xlane.xlu1 %1045  ;;  %v1050_v31 = vsub.f32 %v1033_v43, %v1040_v55 }
 0x48c   :  { %v1052_v32 = vsub.f32 %v1035_v44, %v1046_v56  ;;  %v1160_v44 = vld [vmem:[%s2525_s6 + $0x30] sm:$0xff] }
 0x48d   :  { %v1054_v25 = vmul.f32 1.442695, %v1050_v31  ;;  %v1882_v46 = vpack.c.bf16 %v1161_v45, %v1160_v44 }
 0x48e   :  { %v1058_v33 = vmul.f32 1.442695, %v1052_v32  ;;  %v1043_v34 = vpop.xlane.xlu0 %1042 }
 0x48f   :  { %1939 = vpow2.f32 %v1054_v25  ;;  %v1049_v35 = vpop.xlane.xlu1 %1048  ;;  %v1051_v41 = vsub.f32 %v1034_v51, %v1043_v34 }
 0x490   :  { %1941 = vpow2.f32 %v1058_v33  ;;  %v1053_v13 = vsub.f32 %v1036_v52, %v1049_v35 }
 0x491   :  { %v1056_v14 = vmul.f32 1.442695, %v1051_v41 }
 0x492   :  { %v1060_v38 = vmul.f32 1.442695, %v1053_v13 }
 0x493   :  { %1943 = vpow2.f32 %v1056_v14  ;;  %v1133_v14 = vld [vmem:[%s2524_s5 + $0x18] sm:$0xff] }
 0x494   :  { %1945 = vpow2.f32 %v1060_v38 }
 0x499   :  { %v1940_v37 = vpop.eup %1939 }
 0x49a   :  { %v1942_v39 = vpop.eup %1941  ;;  %v1062_v57 = vsel %vm1037_vm3, %v1940_v37, 0.0 }
 0x49b   :  { %v1068_v60 = vsel %vm1037_vm3, %v1942_v39, 0.0  ;;  %1063 = vadd.xlane.f32.xlu0 %v1062_v57 }
 0x49c   :  { %1069 = vadd.xlane.f32.xlu1 %v1068_v60 }
 0x49d   :  { %v1944_v61 = vpop.eup %1943 }
 0x49e   :  { %v1946_v63 = vpop.eup %1945  ;;  %v1065_v58 = vsel %vm1037_vm3, %v1944_v61, 0.0 }
 0x49f   :  { %v1071_v2 = vsel %vm1037_vm3, %v1946_v63, 0.0  ;;  %1066 = vadd.xlane.f32.xlu0 %v1065_v58 }
 0x4a0   :  { %1072 = vadd.xlane.f32.xlu1 %v1071_v2 }
 0x528   :  { %v1064_v0 = vpop.xlane.xlu0 %1063 }
 0x529   :  { %v1070_v1 = vpop.xlane.xlu1 %1069  ;;  %1947 = vrcp.f32 %v1064_v0 }
 0x52c   :  { %v1067_v3 = vpop.xlane.xlu0 %1066 }
 0x52d   :  { %v1073_v59 = vpop.xlane.xlu1 %1072  ;;  %1949 = vrcp.f32 %v1067_v3 }
 0x52e   :  { %1951 = vrcp.f32 %v1073_v59 }
 0x52f   :  { %1953 = vrcp.f32 %v1070_v1 }
 0x533   :  { %v1948_v5 = vpop.eup %1947 }
 0x534   :  { %v1078_v8 = vmul.f32 %v1948_v5, %v1940_v37 }
 0x536   :  { %1084 = vperm.xlu0 %1917, %v1078_v8  }
 0x537   :  { %v1950_v9 = vpop.eup %1949 }
 0x538   :  { %v1079_v10 = vmul.f32 %v1950_v9, %v1944_v61  ;;  %v1952_v12 = vpop.eup %1951 }
 0x539   :  { %v1081_v17 = vmul.f32 %v1952_v12, %v1946_v63  ;;  %v1954_v18 = vpop.eup %1953 }
 0x53a   :  { %1089 = vperm.xlu1 %1918, %v1079_v10   ;;  %1922 = vset.pattern.permute.xlu0 %v1997_v15  ;;  %v1080_v19 = vmul.f32 %v1954_v18, %v1942_v39  ;;  %v1471_v39 = vld [vmem:[%s2526_s7] ss:$0 sm:$0xff] }
 0x53e   :  { %1099 = vperm.xlu1 %1918, %v1081_v17  }
 0x542   :  { %1919 = vset.pattern.permute.xlu1 %v1997_v15 }
 0x543   :  { %1111 = vperm.xlu1 %1919, %v1079_v10  }
 0x547   :  { %1920 = vset.pattern.permute.xlu1 %v1995_v7  ;;  %v1157_v7 = vld [vmem:[%s2525_s6 + $0x18] sm:$0xff]  ;;  %s1998_s6 = smov 32  }
 0x548   :  { %1094 = vperm.xlu1 %1920, %v1080_v19   ;;  %v1874_v24 = vpack.c.bf16 %v1157_v7, %v1156_v22 }
 0x54a   :  { %1875 = vmatprep.subr.bf16.mxu0 %v1874_v24  ;;  %1887 = vmatprep.subr.bf16.mxu1 %v1874_v24 }
 0x54b   :  { %1877 = vmatpush3.bf16.msra.mxu0 %v1874_v24  ;;  %1891 = vmatpush3.bf16.msra.mxu1 %v1874_v24 }
 0x54c   :  { %1921 = vset.pattern.permute.xlu1 %v1997_v15  ;;  %1879 = vmatprep.subr.bf16.mxu0 %v1878_v28 }
 0x54d   :  { %1107 = vperm.xlu1 %1921, %v1078_v8   ;;  %1888 = vmatprep.subr.bf16.mxu1 %v1878_v28 }
 0x54f   :  { %1881 = vmatpush3.bf16.msra.mxu0 %v1878_v28  ;;  %1892 = vmatpush3.bf16.msra.mxu1 %v1878_v28 }
 0x550   :  { %1883 = vmatprep.subr.bf16.mxu0 %v1882_v46  ;;  %1889 = vmatprep.subr.bf16.mxu1 %v1882_v46 }
 0x551   :  { %1115 = vperm.xlu1 %1921, %v1080_v19  }
 0x553   :  { %1885 = vmatpush3.bf16.msra.mxu0 %v1882_v46  ;;  %1893 = vmatpush3.bf16.msra.mxu1 %v1882_v46 }
 0x555   :  { %1119 = vperm.xlu1 %1921, %v1081_v17  }
 0x5b5   :  { %v1085_v48 = vpop.permute.xlu0 %1084 }
 0x5b6   :  { %v1102_v50 = vmul.f32 %v1085_v48, %v2375_v42 }
 0x5b9   :  { %v1090_v30 = vpop.permute.xlu1 %1089 }
 0x5ba   :  { %v1103_v55 = vmul.f32 %v1090_v30, %v2372_v40  ;;  %v1130_v40 = vld [vmem:[%s2524_s5] sm:$0xff] }
 0x5bd   :  { %v1100_v29 = vpop.permute.xlu1 %1099 }
 0x5be   :  { %v1105_v34 = vmul.f32 %v1100_v29, %v2382_v62  ;;  %v1132_v62 = vld [vmem:[%s2524_s5 + $0x10] sm:$0xff] }
 0x5c2   :  { %v1112_v43 = vpop.permute.xlu1 %1111 }
 0x5c3   :  { %v1123_v52 = vmul.f32 %v1112_v43, %v2397_v11  ;;  %v1131_v11 = vld [vmem:[%s2524_s5 + $0x8] sm:$0xff]  ;;  %s1999_s5 = smov [#allocation2]  }
 0x5c4   :  { %s1383_s7 = sshll.u32 %s1999_s5, 4  ;;  %s1384_s7 = int_to_ptr.vmem [resolvable:$true] %s1383_s7 }
 0x5c5   :  { %v1127_v32 = vadd.f32 %v1123_v52, %v1103_v55  ;;  %s1971_s25 = scalar_lea.vmem %s1384_s7, 512  ;;  %p1976_p1 = scmp.lt.s32.totalorder %s1384_s7, %s1384_s7 }
 0x5c6   :  { %p1972_p0 = scmp.ne.s32.totalorder %s1384_s7, %s1971_s25  ;;  %p1977_p2 = scmp.lt.s32.totalorder %s1971_s25, %s1971_s25 }
 0x5c7   :  { %v1095_v47 = vpop.permute.xlu1 %1094 }
 0x5c8   :  { %v1104_v56 = vmul.f32 %v1095_v47, %v2366_v36  ;;  %p1978_p3 = por %p1977_p2, %p1976_p1 }
 0x5ca   :  { %p1979_p4 = pnand %p1978_p3, %p1972_p0 }
 0x5cc   :  { %v1108_v49 = vpop.permute.xlu1 %1107 }
 0x5cd   :  { %v1122_v51 = vmul.f32 %v1108_v49, %v2391_v4 }
 0x5cf   :  { %v1126_v53 = vadd.f32 %v1122_v51, %v1102_v50 }
 0x5d0   :  { %v1116_v54 = vpop.permute.xlu1 %1115 }
 0x5d1   :  { %v1124_v31 = vmul.f32 %v1116_v54, %v2393_v6  ;;  %1138 = vrot.lane.b32.xlu1 %v1126_v53, %s1998_s6 }
 0x5d3   :  { %v1128_v25 = vadd.f32 %v1124_v31, %v1104_v56 }
 0x5d4   :  { %v1120_v33 = vpop.permute.xlu1 %1119 }
 0x5d5   :  { %v1125_v42 = vmul.f32 %v1120_v33, %v2400_v16  ;;  %1142 = vrot.lane.b32.xlu0 %v1128_v25, %s1998_s6  ;;  %1140 = vrot.lane.b32.xlu1 %v1127_v32, %s1998_s6 }
 0x5d7   :  { %v1129_v4 = vadd.f32 %v1125_v42, %v1105_v34 }
 0x5d9   :  { %1144 = vrot.lane.b32.xlu0 %v1129_v4, %s1998_s6 }
 0x643   :  { %v1139_v36 = vpop.permute.xlu1 %1138 }
 0x644   :  { %v1150_v6 = vsel %vm999_vm1, %v1130_v40, %v1139_v36 }
 0x645   :  { %1768 = vmatprep.mubr.msk.f32.mxu0 %vm97_vm0, %v1150_v6 }
 0x647   :  { %v1141_v16 = vpop.permute.xlu1 %1140  ;;  %v1143_v35 = vpop.permute.xlu0 %1142 }
 0x648   :  { %v1151_v41 = vsel %vm999_vm1, %v1131_v11, %v1141_v16  ;;  %v1152_v13 = vsel %vm999_vm1, %v1132_v62, %v1143_v35 }
 0x649   :  { %1769 = vmatmul.mubr.msk.f32.vlgmr.msra.gmra.mrb[18].mxu0 %vm97_vm0, %v1151_v41  ;;  %1771 = vmatprep.mubr.msk.f32.mxu1 %vm97_vm0, %v1152_v13 }
 0x64b   :  { %v1145_v38 = vpop.permute.xlu0 %1144 }
 0x64c   :  { %v1153_v37 = vsel %vm999_vm1, %v1133_v14, %v1145_v38 }
 0x64d   :  { %1772 = vmatmul.mubr.msk.f32.vlgmr.msra.gmra.mrb[18].mxu1 %vm97_vm0, %v1153_v37 }
 0x71c   :  { %v1770_v57 = vpop.f32.mrb[18].mxu0 }
 0x71d   :  { %v2471_v60 = vadd.f32 %v1770_v57, %v1471_v39  ;;  %v1247_v61 = vpop.f32.mrb[19].mxu0 }
 0x71e   :  { %v2473_v63 = vadd.f32 %v1471_v39, %v1247_v61 }
 0x71f   :  { %v2476_v58 = vmul.f32 0.70710677, %v2471_v60 }
 0x720   :  { %v2479_v2 = vmul.f32 0.70710677, %v2473_v63  ;;  %v1773_v0 = vpop.f32.mrb[18].mxu1 }
 0x721   :  { %v1275_v1 = vand.u32 2147483647, %v2476_v58  ;;  %v2482_v3 = vadd.f32 %v1773_v0, %v1471_v39  ;;  %v1257_v59 = vpop.f32.mrb[19].mxu1  ;;  %vm1355_vm4 = vcmp.lt.f32.partialorder %v2476_v58, 0.0 }
 0x722   :  { %v1274_v5 = vand.u32 2147483647, %v2479_v2  ;;  %v2485_v8 = vadd.f32 %v1471_v39, %v1257_v59  ;;  %vm1354_vm5 = vcmp.lt.f32.partialorder %v2479_v2, 0.0 }
 0x723   :  { %v1279_v9 = vmul.f32 0.3275911, %v1275_v1  ;;  %v2488_v10 = vmul.f32 0.70710677, %v2482_v3  ;;  %v1331_v24 = vsub.f32 0.0, %v1275_v1  ;;  %v1269_v2 = vmul.f32 0.5, %v2482_v3 }
 0x724   :  { %v1278_v12 = vmul.f32 0.3275911, %v1274_v5  ;;  %v2491_v15 = vmul.f32 0.70710677, %v2485_v8  ;;  %v1330_v26 = vsub.f32 0.0, %v1274_v5 }
 0x725   :  { %v1283_v17 = vadd.f32 1.0, %v1279_v9  ;;  %v1277_v18 = vand.u32 2147483647, %v2488_v10  ;;  %v1335_v28 = vmul.f32 %v1331_v24, %v1275_v1  ;;  %vm1357_vm6 = vcmp.lt.f32.partialorder %v2488_v10, 0.0 }
 0x726   :  { %v1282_v19 = vadd.f32 1.0, %v1278_v12  ;;  %v1276_v20 = vand.u32 2147483647, %v2491_v15  ;;  %v1334_v44 = vmul.f32 %v1330_v26, %v1274_v5  ;;  %vm1356_vm7 = vcmp.lt.f32.partialorder %v2491_v15, 0.0 }
 0x727   :  { %1955 = vrcp.f32 %v1283_v17  ;;  %v1281_v21 = vmul.f32 0.3275911, %v1277_v18  ;;  %v1333_v30 = vsub.f32 0.0, %v1277_v18  ;;  %v1340_v49 = vmul.f32 1.442695, %v1335_v28 }
 0x728   :  { %1957 = vrcp.f32 %v1282_v19  ;;  %v1280_v22 = vmul.f32 0.3275911, %v1276_v20  ;;  %v1332_v45 = vsub.f32 0.0, %v1276_v20  ;;  %v1338_v54 = vmul.f32 1.442695, %v1334_v44 }
 0x729   :  { %v1285_v23 = vadd.f32 1.0, %v1281_v21  ;;  %v1337_v51 = vmul.f32 %v1333_v30, %v1277_v18 }
 0x72a   :  { %v1284_v7 = vadd.f32 1.0, %v1280_v22  ;;  %v1336_v56 = vmul.f32 %v1332_v45, %v1276_v20 }
 0x72b   :  { %1959 = vrcp.f32 %v1285_v23  ;;  %v1344_v42 = vmul.f32 1.442695, %v1337_v51 }
 0x72c   :  { %1961 = vrcp.f32 %v1284_v7  ;;  %v1342_v6 = vmul.f32 1.442695, %v1336_v56 }
 0x72d   :  { %1963 = vpow2.f32 %v1340_v49 }
 0x72e   :  { %1965 = vpow2.f32 %v1338_v54 }
 0x72f   :  { %1967 = vpow2.f32 %v1344_v42 }
 0x730   :  { %1969 = vpow2.f32 %v1342_v6 }
 0x731   :  { %v1956_v27 = vpop.eup %1955 }
 0x732   :  { %v1958_v29 = vpop.eup %1957  ;;  %v1295_v43 = vmul.f32 1.0614054, %v1956_v27 }
 0x733   :  { %v1294_v46 = vmul.f32 1.0614054, %v1958_v29 }
 0x734   :  { %v1299_v47 = vadd.f32 -1.4531521, %v1295_v43 }
 0x735   :  { %v1960_v48 = vpop.eup %1959  ;;  %v1298_v50 = vadd.f32 -1.4531521, %v1294_v46 }
 0x736   :  { %v1962_v52 = vpop.eup %1961  ;;  %v1303_v53 = vmul.f32 %v1956_v27, %v1299_v47  ;;  %v1297_v55 = vmul.f32 1.0614054, %v1960_v48  ;;  %v1267_v47 = vmul.f32 0.5, %v2471_v60 }
 0x737   :  { %v1302_v31 = vmul.f32 %v1958_v29, %v1298_v50  ;;  %v1296_v32 = vmul.f32 1.0614054, %v1962_v52  ;;  %v1964_v9 = vpop.eup %1963 }
 0x738   :  { %v1307_v25 = vadd.f32 1.4214138, %v1303_v53  ;;  %v1301_v33 = vadd.f32 -1.4531521, %v1297_v55  ;;  %v1966_v18 = vpop.eup %1965 }
 0x739   :  { %v1306_v34 = vadd.f32 1.4214138, %v1302_v31  ;;  %v1300_v4 = vadd.f32 -1.4531521, %v1296_v32  ;;  %v1968_v24 = vpop.eup %1967 }
 0x73a   :  { %v1311_v40 = vmul.f32 %v1956_v27, %v1307_v25  ;;  %v1305_v36 = vmul.f32 %v1960_v48, %v1301_v33  ;;  %v1970_v30 = vpop.eup %1969 }
 0x73b   :  { %v1310_v11 = vmul.f32 %v1958_v29, %v1306_v34  ;;  %v1304_v62 = vmul.f32 %v1962_v52, %v1300_v4 }
 0x73c   :  { %v1315_v16 = vadd.f32 -0.28449672, %v1311_v40  ;;  %v1309_v35 = vadd.f32 1.4214138, %v1305_v36 }
 0x73d   :  { %v1314_v41 = vadd.f32 -0.28449672, %v1310_v11  ;;  %v1308_v13 = vadd.f32 1.4214138, %v1304_v62 }
 0x73e   :  { %v1319_v14 = vmul.f32 %v1956_v27, %v1315_v16  ;;  %v1313_v38 = vmul.f32 %v1960_v48, %v1309_v35 }
 0x73f   :  { %v1318_v37 = vmul.f32 %v1958_v29, %v1314_v41  ;;  %v1312_v39 = vmul.f32 %v1962_v52, %v1308_v13 }
 0x740   :  { %v1323_v57 = vadd.f32 0.2548296, %v1319_v14  ;;  %v1317_v61 = vadd.f32 -0.28449672, %v1313_v38 }
 0x741   :  { %v1322_v0 = vadd.f32 0.2548296, %v1318_v37  ;;  %v1316_v1 = vadd.f32 -0.28449672, %v1312_v39 }
 0x742   :  { %v1327_v59 = vmul.f32 %v1956_v27, %v1323_v57  ;;  %v1321_v5 = vmul.f32 %v1960_v48, %v1317_v61 }
 0x743   :  { %v1326_v12 = vmul.f32 %v1958_v29, %v1322_v0  ;;  %v1320_v17 = vmul.f32 %v1962_v52, %v1316_v1 }
 0x744   :  { %v1347_v19 = vmul.f32 %v1964_v9, %v1327_v59  ;;  %v1325_v20 = vadd.f32 0.2548296, %v1321_v5 }
 0x745   :  { %v1346_v21 = vmul.f32 %v1966_v18, %v1326_v12  ;;  %v1324_v22 = vadd.f32 0.2548296, %v1320_v17 }
 0x746   :  { %v1351_v23 = vsub.f32 1.0, %v1347_v19  ;;  %v1329_v7 = vmul.f32 %v1960_v48, %v1325_v20  ;;  %v1266_v48 = vmul.f32 0.5, %v2473_v63  ;;  %v1268_v63 = vmul.f32 0.5, %v2485_v8 }
 0x747   :  { %v1350_v26 = vsub.f32 1.0, %v1346_v21  ;;  %v1328_v28 = vmul.f32 %v1962_v52, %v1324_v22 }
 0x748   :  { %v1359_v43 = vsub.f32 0.0, %v1351_v23  ;;  %v1349_v44 = vmul.f32 %v1968_v24, %v1329_v7 }
 0x749   :  { %v1358_v27 = vsub.f32 0.0, %v1350_v26  ;;  %v1348_v45 = vmul.f32 %v1970_v30, %v1328_v28 }
 0x74a   :  { %v1363_v46 = vsel %vm1355_vm4, %v1359_v43, %v1351_v23  ;;  %v1353_v29 = vsub.f32 1.0, %v1349_v44 }
 0x74b   :  { %v1367_v49 = vadd.f32 1.0, %v1363_v46  ;;  %v1362_v50 = vsel %vm1354_vm5, %v1358_v27, %v1350_v26  ;;  %v1352_v51 = vsub.f32 1.0, %v1348_v45 }
 0x74c   :  { %v1366_v53 = vadd.f32 1.0, %v1362_v50  ;;  %v1361_v52 = vsub.f32 0.0, %v1353_v29 }
 0x74d   :  { %v1371_v54 = vmul.f32 %v1367_v49, %v1267_v47  ;;  %v1360_v55 = vsub.f32 0.0, %v1352_v51 }
 0x74e   :  { %v1370_v58 = vmul.f32 %v1366_v53, %v1266_v48  ;;  %v1365_v56 = vsel %vm1357_vm6, %v1361_v52, %v1353_v29 }
 0x74f   :  { %1375 = vst.msk [vmem:[#allocation2 + $0x8] sm:$0xff] %vm999_vm1, %v1371_v54  ;;  %v1369_v60 = vadd.f32 1.0, %v1365_v56  ;;  %v1364_v31 = vsel %vm1356_vm7, %v1360_v55, %v1352_v51 }
 0x750   :  { %1374 = vst.msk [vmem:[#allocation2] sm:$0xff] %vm999_vm1, %v1370_v58  ;;  %v1368_v32 = vadd.f32 1.0, %v1364_v31 }
 0x751   :  { %v1373_v25 = vmul.f32 %v1369_v60, %v1269_v2 }
 0x752   :  { %v1372_v10 = vmul.f32 %v1368_v32, %v1268_v63 }
 0x753   :  { %1377 = vst.msk [vmem:[#allocation2 + $0x18] sm:$0xff] %vm999_vm1, %v1373_v25 }
 0x754   :  { %1376 = vst.msk [vmem:[#allocation2 + $0x10] sm:$0xff] %vm999_vm1, %v1372_v10 }
 0x755   :  { %1982 = shalt.err (!%p1979_p4)
}
 0x756   :  { %s1983_s27 = scalar_lea.hbm %s2527_s8, 512 }
 0x757   :  { %p1984_p5 = scmp.ne.s32.totalorder %s2527_s8, %s1983_s27  ;;  %p1987_p6 = scmp.lt.u32.totalorder %s1983_s27, %s2527_s8 }
 0x759   :  { %p1989_p7 = pnand %p1987_p6, %p1984_p5 }
 0x75b   :  { %1992 = shalt.err (!%p1989_p7)
}
 0x75c   :  { %s2000_s9 = smov 128   ;;  %s2001_s10 = smov 8  }
 0x75d   :  { %1389 = dma.vmem_to_hbm [thread:$0]  %s1384_s7, 512, %s2527_s8, [#allocation3], %s2000_s9, %s2000_s9, %s2001_s10  }
 0x75e   :  { %1993 = dma.done.wait [#allocation3], 512  }
 0x75f   :  { %1994 = vsyncadd [#allocation3], 4294966784 }
 0x760   :  { %1393 = vsyncpa [#allocation3], 1 }

// kernel: graph_relation_encoder.2
= control target key start
LH: loop header
LB: loop body
LE: loop exit
PB: predicated region body
PF: predicated region fallthrough
CT: control target
= control target key end

     0   :  { %v1955_v3 = vmov 0   ;;  %vm96_vm0 = vcmask 523264   ;;  %v1956_v59 = vmov 32   ;;  %vm998_vm1 = vcmask 261120   ;;  %s2476_s0 = inlined_call_operand.vmem [shape: f32[2,16,33], index: 0, kind: input, shape index: {}]   ;;  %s2477_s4 = inlined_call_operand.vmem [shape: f32[2,65,33], index: 4, kind: input, shape index: {}]   ;;  %s2478_s1 = inlined_call_operand.vmem [shape: f32[2,2,64,64], index: 1, kind: input, shape index: {}]   ;;  %s2479_s2 = inlined_call_operand.vmem [shape: f32[2,16,1], index: 2, kind: input, shape index: {}]   ;;  %s2480_s3 = inlined_call_operand.vmem [shape: f32[2,1,32], index: 3, kind: input, shape index: {}]   ;;  %s2481_s6 = inlined_call_operand.vmem [shape: f32[64,32], index: 6, kind: input, shape index: {}]   ;;  %s2482_s5 = inlined_call_operand.vmem [shape: f32[2,16,32], index: 5, kind: input, shape index: {}]   ;;  %s2483_s7 = inlined_call_operand.vmem [shape: f32[1,32], index: 7, kind: input, shape index: {}]   ;;  %s2484_s8 = inlined_call_operand.vmem [shape: f32[2,16,32], index: 8, kind: output, shape index: {}]  }
   0x1   :  { %v68_v0 = vld [vmem:[%s2476_s0] sm:$0xff]  ;;  %v69_v1 = vld [vmem:[%s2476_s0 + $0x8] sm:$0xff]  ;;  %1898 = vset.pattern.permute.xlu1 %v1955_v3  ;;  %1897 = vset.pattern.permute.xlu0 %v1955_v3  ;;  %v70_v6 = vld [vmem:[%s2476_s0 + $0x10] sm:$0xff]  ;;  %vm1027_vm2 = vcmask 7168   ;;  %vm1036_vm3 = vcmask 15360  }
   0x2   :  { %v72_v2 = vld [vmem:[%s2477_s4] sm:$0xff]  ;;  %v73_v4 = vld [vmem:[%s2477_s4 + $0x8] sm:$0xff]  ;;  %v71_v7 = vld [vmem:[%s2476_s0 + $0x18] sm:$0xff] }
   0x3   :  { %v80_v5 = vmul.f32 %v72_v2, %v68_v0  ;;  %v81_v8 = vmul.f32 %v73_v4, %v69_v1  ;;  %v88_v9 = vmul.f32 %v72_v2, %v70_v6  ;;  %v89_v10 = vmul.f32 %v73_v4, %v71_v7  ;;  %v74_v11 = vld [vmem:[%s2477_s4 + $0x10] sm:$0xff]  ;;  %v75_v12 = vld [vmem:[%s2477_s4 + $0x18] sm:$0xff]  ;;  %v76_v13 = vld [vmem:[%s2477_s4 + $0x20] sm:$0xff] }
   0x4   :  { %v82_v14 = vmul.f32 %v74_v11, %v68_v0  ;;  %v83_v15 = vmul.f32 %v75_v12, %v69_v1  ;;  %v90_v16 = vmul.f32 %v74_v11, %v70_v6  ;;  %v91_v17 = vmul.f32 %v75_v12, %v71_v7  ;;  %v77_v18 = vld [vmem:[%s2477_s4 + $0x28] sm:$0xff]  ;;  %v78_v23 = vld [vmem:[%s2477_s4 + $0x30] sm:$0xff]  ;;  %v79_v24 = vld [vmem:[%s2477_s4 + $0x38] sm:$0xff] }
   0x5   :  { %v1761_v19 = vpack.c.bf16 %v81_v8, %v80_v5  ;;  %v1777_v20 = vpack.c.bf16 %v89_v10, %v88_v9  ;;  %v84_v21 = vmul.f32 %v76_v13, %v68_v0  ;;  %v85_v22 = vmul.f32 %v77_v18, %v69_v1  ;;  %v2045_v25 = vld [vmem:[%s2478_s1] sm:$0xff]  ;;  %v63_v37 = vld [vmem:[%s2479_s2 + $0x8] sm:$0xff]  ;;  %v65_v39 = vld [vmem:[%s2479_s2 + $0x18] sm:$0xff] }
   0x6   :  { %v1765_v26 = vpack.c.bf16 %v83_v15, %v82_v14  ;;  %v1781_v27 = vpack.c.bf16 %v91_v17, %v90_v16  ;;  %v92_v28 = vmul.f32 %v76_v13, %v70_v6  ;;  %v93_v29 = vmul.f32 %v77_v18, %v71_v7  ;;  %1587 = vmatprep.mubr.msk.f32.mxu0 %vm96_vm0, %v2045_v25  ;;  %v2052_v30 = vld [vmem:[%s2478_s1 + $0x80] sm:$0xff]  ;;  %v64_v40 = vld [vmem:[%s2479_s2 + $0x10] sm:$0xff]  ;;  %v2071_v43 = vld [vmem:[%s2478_s1 + $0x8] sm:$0xff] }
   0x7   :  { %1762 = vmatprep.subr.bf16.mxu0 %v1761_v19  ;;  %1778 = vmatprep.subr.bf16.mxu1 %v1777_v20  ;;  %v1769_v31 = vpack.c.bf16 %v85_v22, %v84_v21  ;;  %v86_v32 = vmul.f32 %v78_v23, %v68_v0  ;;  %v87_v33 = vmul.f32 %v79_v24, %v69_v1  ;;  %v62_v38 = vld [vmem:[%s2479_s2] sm:$0xff]  ;;  %v2076_v44 = vld [vmem:[%s2478_s1 + $0x88] sm:$0xff]  ;;  %v2081_v45 = vld [vmem:[%s2478_s1 + $0x10] sm:$0xff] }
   0x8   :  { %1764 = vmatpush3.bf16.msra.mxu0 %v1761_v19  ;;  %1780 = vmatpush3.bf16.msra.mxu1 %v1777_v20  ;;  %v1785_v34 = vpack.c.bf16 %v93_v29, %v92_v28  ;;  %v94_v35 = vmul.f32 %v78_v23, %v70_v6  ;;  %v95_v36 = vmul.f32 %v79_v24, %v71_v7  ;;  %v2086_v46 = vld [vmem:[%s2478_s1 + $0x90] sm:$0xff]  ;;  %v2099_v47 = vld [vmem:[%s2478_s1 + $0x18] sm:$0xff]  ;;  %v2109_v49 = vld [vmem:[%s2478_s1 + $0x20] sm:$0xff] }
   0x9   :  { %1766 = vmatprep.subr.bf16.mxu0 %v1765_v26  ;;  %1782 = vmatprep.subr.bf16.mxu1 %v1781_v27  ;;  %v1773_v41 = vpack.c.bf16 %v87_v33, %v86_v32  ;;  %v2104_v48 = vld [vmem:[%s2478_s1 + $0x98] sm:$0xff]  ;;  %v2114_v50 = vld [vmem:[%s2478_s1 + $0xa0] sm:$0xff]  ;;  %v2127_v51 = vld [vmem:[%s2478_s1 + $0x28] sm:$0xff] }
   0xa   :  { %1615 = vmatprep.mubr.msk.f32.mxu1 %vm96_vm0, %v2052_v30  ;;  %383 = vperm.xlu1 %1898, %v63_v37   ;;  %v1789_v42 = vpack.c.bf16 %v95_v36, %v94_v35  ;;  %v2132_v52 = vld [vmem:[%s2478_s1 + $0xa8] sm:$0xff]  ;;  %v2137_v53 = vld [vmem:[%s2478_s1 + $0x30] sm:$0xff]  ;;  %v2155_v55 = vld [vmem:[%s2478_s1 + $0x38] sm:$0xff] }
   0xb   :  { %378 = vperm.xlu0 %1897, %v62_v38   ;;  %v2142_v54 = vld [vmem:[%s2478_s1 + $0xb0] sm:$0xff]  ;;  %v2160_v56 = vld [vmem:[%s2478_s1 + $0xb8] sm:$0xff]  ;;  %v1381_v57 = vld [vmem:[%s2478_s1 + $0x40] sm:$0xff] }
   0xc   :  { %1768 = vmatpush3.bf16.msra.mxu0 %v1765_v26  ;;  %1784 = vmatpush3.bf16.msra.mxu1 %v1781_v27  ;;  %v1389_v58 = vld [vmem:[%s2478_s1 + $0xc0] sm:$0xff] }
   0xd   :  { %1770 = vmatprep.subr.bf16.mxu0 %v1769_v31  ;;  %1786 = vmatprep.subr.bf16.mxu1 %v1785_v34  ;;  %v1413_v27 = vld [vmem:[%s2477_s4 + $0x40] ss:$0 sm:$0xff] }
   0xe   :  { %393 = vperm.xlu1 %1898, %v65_v39  }
   0xf   :  { %388 = vperm.xlu0 %1897, %v64_v40  }
  0x10   :  { %1772 = vmatpush3.bf16.msra.mxu0 %v1769_v31  ;;  %1788 = vmatpush3.bf16.msra.mxu1 %v1785_v34 }
  0x11   :  { %1774 = vmatprep.subr.bf16.mxu0 %v1773_v41  ;;  %1790 = vmatprep.subr.bf16.mxu1 %v1789_v42 }
  0x12   :  { %1899 = vset.pattern.permute.xlu1 %v1956_v59 }
  0x13   :  { %1900 = vset.pattern.permute.xlu0 %v1956_v59 }
  0x14   :  { %1776 = vmatpush3.bf16.msra.mxu0 %v1773_v41  ;;  %1792 = vmatpush3.bf16.msra.mxu1 %v1789_v42 }
  0x17   :  { %1588 = vmatmul.mubr.msk.f32.vlgmr.msra.gmra.mrb[0].mxu0 %vm96_vm0, %v2071_v43  ;;  %1616 = vmatmul.mubr.msk.f32.vlgmr.msra.gmra.mrb[0].mxu1 %vm96_vm0, %v2076_v44 }
  0x18   :  { %1590 = vmatprep.mubr.msk.f32.mxu0 %vm96_vm0, %v2081_v45  ;;  %1618 = vmatprep.mubr.msk.f32.mxu1 %vm96_vm0, %v2086_v46 }
  0x1b   :  { %1591 = vmatmul.mubr.msk.f32.gmra.mrb[2].mxu0 %vm96_vm0, %v2099_v47  ;;  %1619 = vmatmul.mubr.msk.f32.gmra.mrb[2].mxu1 %vm96_vm0, %v2104_v48 }
  0x1c   :  { %1593 = vmatprep.mubr.msk.f32.mxu0 %vm96_vm0, %v2109_v49  ;;  %1621 = vmatprep.mubr.msk.f32.mxu1 %vm96_vm0, %v2114_v50 }
  0x1f   :  { %1594 = vmatmul.mubr.msk.f32.gmra.mrb[4].mxu0 %vm96_vm0, %v2127_v51  ;;  %1622 = vmatmul.mubr.msk.f32.gmra.mrb[4].mxu1 %vm96_vm0, %v2132_v52 }
  0x20   :  { %1596 = vmatprep.mubr.msk.f32.mxu0 %vm96_vm0, %v2137_v53  ;;  %1624 = vmatprep.mubr.msk.f32.mxu1 %vm96_vm0, %v2142_v54 }
  0x23   :  { %1597 = vmatmul.mubr.msk.f32.gmra.mrb[6].mxu0 %vm96_vm0, %v2155_v55  ;;  %1625 = vmatmul.mubr.msk.f32.gmra.mrb[6].mxu1 %vm96_vm0, %v2160_v56 }
  0x24   :  { %1643 = vmatprep.mubr.msk.f32.mxu0 %vm96_vm0, %v1381_v57  ;;  %1671 = vmatprep.mubr.msk.f32.mxu1 %vm96_vm0, %v1389_v58 }
  0x89   :  { %v2174_v13 = vpop.permute.xlu1 %383 }
  0x8a   :  { %v2176_v14 = vpop.permute.xlu0 %378 }
  0x8d   :  { %v2181_v38 = vpop.permute.xlu1 %393 }
  0x8e   :  { %v2183_v41 = vpop.permute.xlu0 %388 }
  0xea   :  { %v1589_v60 = vpop.f32.mrb[0].mxu0  ;;  %v1617_v61 = vpop.f32.mrb[0].mxu1 }
  0xeb   :  { %v187_v62 = vpop.f32.mrb[1].mxu0  ;;  %v316_v63 = vpop.f32.mrb[1].mxu1 }
  0xec   :  { %v1793_v0 = vpack.c.bf16 %v1589_v60, %v187_v62  ;;  %v1809_v1 = vpack.c.bf16 %v1617_v61, %v316_v63 }
  0xee   :  { %v1592_v2 = vpop.f32.mrb[2].mxu0  ;;  %v1620_v4 = vpop.f32.mrb[2].mxu1  ;;  %1794 = vmatprep.subr.bf16.mxu0 %v1793_v0  ;;  %1810 = vmatprep.subr.bf16.mxu1 %v1809_v1 }
  0xef   :  { %v356_v5 = vadd.f32 %v1592_v2, %v1589_v60  ;;  %v358_v6 = vadd.f32 %v1620_v4, %v1617_v61  ;;  %v197_v7 = vpop.f32.mrb[3].mxu0  ;;  %v326_v8 = vpop.f32.mrb[3].mxu1  ;;  %1796 = vmatpush3.bf16.msra.mxu0 %v1793_v0  ;;  %1812 = vmatpush3.bf16.msra.mxu1 %v1809_v1  ;;  %v1382_v60 = vld [vmem:[%s2478_s1 + $0x48] sm:$0xff]  ;;  %v1391_v0 = vld [vmem:[%s2478_s1 + $0xd0] sm:$0xff] }
  0xf0   :  { %v355_v9 = vadd.f32 %v197_v7, %v187_v62  ;;  %v1797_v10 = vpack.c.bf16 %v1592_v2, %v197_v7  ;;  %v357_v11 = vadd.f32 %v326_v8, %v316_v63  ;;  %v1813_v12 = vpack.c.bf16 %v1620_v4, %v326_v8  ;;  %v1390_v61 = vld [vmem:[%s2478_s1 + $0xc8] sm:$0xff]  ;;  %v1383_v63 = vld [vmem:[%s2478_s1 + $0x50] sm:$0xff]  ;;  %v1392_v7 = vld [vmem:[%s2478_s1 + $0xd8] sm:$0xff] }
  0xf1   :  { %v1385_v8 = vld [vmem:[%s2478_s1 + $0x60] sm:$0xff] }
  0xf2   :  { %v1595_v15 = vpop.f32.mrb[4].mxu0  ;;  %v1623_v16 = vpop.f32.mrb[4].mxu1  ;;  %1798 = vmatprep.subr.bf16.mxu0 %v1797_v10  ;;  %1814 = vmatprep.subr.bf16.mxu1 %v1813_v12 }
  0xf3   :  { %v360_v17 = vadd.f32 %v1595_v15, %v356_v5  ;;  %v362_v18 = vadd.f32 %v1623_v16, %v358_v6  ;;  %v207_v19 = vpop.f32.mrb[5].mxu0  ;;  %v336_v20 = vpop.f32.mrb[5].mxu1  ;;  %1800 = vmatpush3.bf16.msra.mxu0 %v1797_v10  ;;  %1816 = vmatpush3.bf16.msra.mxu1 %v1813_v12  ;;  %v1384_v6 = vld [vmem:[%s2478_s1 + $0x58] sm:$0xff]  ;;  %v1394_v12 = vld [vmem:[%s2478_s1 + $0xe8] sm:$0xff] }
  0xf4   :  { %v359_v21 = vadd.f32 %v355_v9, %v207_v19  ;;  %v1801_v22 = vpack.c.bf16 %v1595_v15, %v207_v19  ;;  %v361_v23 = vadd.f32 %v357_v11, %v336_v20  ;;  %v1817_v24 = vpack.c.bf16 %v1623_v16, %v336_v20  ;;  %v1393_v9 = vld [vmem:[%s2478_s1 + $0xe0] sm:$0xff]  ;;  %v1386_v11 = vld [vmem:[%s2478_s1 + $0x68] sm:$0xff]  ;;  %v1387_v15 = vld [vmem:[%s2478_s1 + $0x70] sm:$0xff] }
  0xf5   :  { %v1395_v16 = vld [vmem:[%s2478_s1 + $0xf0] sm:$0xff] }
  0xf6   :  { %v1598_v26 = vpop.f32.mrb[6].mxu0  ;;  %v1626_v28 = vpop.f32.mrb[6].mxu1  ;;  %1802 = vmatprep.subr.bf16.mxu0 %v1801_v22  ;;  %1818 = vmatprep.subr.bf16.mxu1 %v1817_v24 }
  0xf7   :  { %v364_v29 = vadd.f32 %v1598_v26, %v360_v17  ;;  %v366_v31 = vadd.f32 %v1626_v28, %v362_v18  ;;  %v217_v32 = vpop.f32.mrb[7].mxu0  ;;  %v346_v33 = vpop.f32.mrb[7].mxu1  ;;  %1804 = vmatpush3.bf16.msra.mxu0 %v1801_v22  ;;  %1820 = vmatpush3.bf16.msra.mxu1 %v1817_v24  ;;  %v1396_v17 = vld [vmem:[%s2478_s1 + $0xf8] sm:$0xff]  ;;  %v1430_v24 = vld [vmem:[%s2477_s4 + $0x48] sm:$0xff] }
  0xf8   :  { %v363_v34 = vadd.f32 %v359_v21, %v217_v32  ;;  %v1805_v35 = vpack.c.bf16 %v1598_v26, %v217_v32  ;;  %v365_v36 = vadd.f32 %v361_v23, %v346_v33  ;;  %v1821_v37 = vpack.c.bf16 %v1626_v28, %v346_v33  ;;  %v1388_v18 = vld [vmem:[%s2478_s1 + $0x78] sm:$0xff]  ;;  %v1431_v23 = vld [vmem:[%s2477_s4 + $0x50] sm:$0xff]  ;;  %v1433_v33 = vld [vmem:[%s2477_s4 + $0x60] sm:$0xff] }
  0xf9   :  { %v373_v39 = vmul.f32 %v1413_v27, %v364_v29  ;;  %v375_v40 = vmul.f32 %v1413_v27, %v366_v31 }
  0xfa   :  { %v372_v42 = vmul.f32 %v1413_v27, %v363_v34  ;;  %1806 = vmatprep.subr.bf16.mxu0 %v1805_v35  ;;  %1822 = vmatprep.subr.bf16.mxu1 %v1821_v37  ;;  %v374_v57 = vmul.f32 %v1413_v27, %v365_v36  ;;  %v1432_v34 = vld [vmem:[%s2477_s4 + $0x58] sm:$0xff] }
  0xfb   :  { %v2186_v58 = vmul.f32 %v2174_v13, %v373_v39  ;;  %v2189_v59 = vmul.f32 %v2181_v38, %v375_v40  ;;  %1808 = vmatpush3.bf16.msra.mxu0 %v1805_v35  ;;  %1824 = vmatpush3.bf16.msra.mxu1 %v1821_v37 }
  0xfc   :  { %v2198_v62 = vmul.f32 %v2183_v41, %v374_v57  ;;  %v2208_v2 = vmul.f32 %v2176_v14, %v372_v42 }
  0xfd   :  { %v401_v1 = vadd.f32 1e-20, %v2186_v58  ;;  %v403_v4 = vadd.f32 1e-20, %v2189_v59 }
  0xfe   :  { %1644 = vmatmul.mubr.msk.f32.vlgmr.msra.gmra.mrb[8].mxu0 %vm96_vm0, %v1382_v60  ;;  %1672 = vmatmul.mubr.msk.f32.vlgmr.msra.gmra.mrb[8].mxu1 %vm96_vm0, %v1390_v61  ;;  %v402_v5 = vadd.f32 1e-20, %v2198_v62  ;;  %v400_v10 = vadd.f32 1e-20, %v2208_v2 }
  0xff   :  { %1907 = vrcp.f32 %v401_v1  ;;  %1646 = vmatprep.mubr.msk.f32.mxu0 %vm96_vm0, %v1383_v63  ;;  %1674 = vmatprep.mubr.msk.f32.mxu1 %vm96_vm0, %v1391_v0  ;;  %v1435_v0 = vld [vmem:[%s2477_s4 + $0x70] sm:$0xff]  ;;  %v1434_v1 = vld [vmem:[%s2477_s4 + $0x68] sm:$0xff] }
 0x100   :  { %1909 = vrcp.f32 %v403_v4 }
 0x101   :  { %1911 = vrcp.f32 %v402_v5 }
 0x102   :  { %1647 = vmatmul.mubr.msk.f32.gmra.mrb[10].mxu0 %vm96_vm0, %v1384_v6  ;;  %1675 = vmatmul.mubr.msk.f32.gmra.mrb[10].mxu1 %vm96_vm0, %v1392_v7  ;;  %1913 = vrcp.f32 %v400_v10 }
 0x103   :  { %1649 = vmatprep.mubr.msk.f32.mxu0 %vm96_vm0, %v1385_v8  ;;  %1677 = vmatprep.mubr.msk.f32.mxu1 %vm96_vm0, %v1393_v9 }
 0x106   :  { %1650 = vmatmul.mubr.msk.f32.gmra.mrb[12].mxu0 %vm96_vm0, %v1386_v11  ;;  %1678 = vmatmul.mubr.msk.f32.gmra.mrb[12].mxu1 %vm96_vm0, %v1394_v12 }
 0x107   :  { %1652 = vmatprep.mubr.msk.f32.mxu0 %vm96_vm0, %v1387_v15  ;;  %1680 = vmatprep.mubr.msk.f32.mxu1 %vm96_vm0, %v1395_v16  ;;  %v1437_v16 = vld [vmem:[%s2477_s4 + $0x80] sm:$0xff] }
 0x109   :  { %v1908_v19 = vpop.eup %1907 }
 0x10a   :  { %1681 = vmatmul.mubr.msk.f32.gmra.mrb[14].mxu1 %vm96_vm0, %v1396_v17  ;;  %415 = vperm.xlu1 %1899, %v1908_v19   ;;  %v1910_v20 = vpop.eup %1909  ;;  %v1436_v17 = vld [vmem:[%s2477_s4 + $0x78] sm:$0xff] }
 0x10b   :  { %1653 = vmatmul.mubr.msk.f32.gmra.mrb[14].mxu0 %vm96_vm0, %v1388_v18  ;;  %1727 = vmatprep.mubr.msk.f32.mxu1 %vm96_vm0, %v2052_v30  ;;  %v1912_v21 = vpop.eup %1911 }
 0x10c   :  { %425 = vperm.xlu0 %1900, %v1910_v20   ;;  %1699 = vmatprep.mubr.msk.f32.mxu0 %vm96_vm0, %v2045_v25  ;;  %v1914_v22 = vpop.eup %1913 }
 0x10e   :  { %420 = vperm.xlu1 %1899, %v1912_v21  }
 0x110   :  { %410 = vperm.xlu0 %1900, %v1914_v22  }
 0x1d1   :  { %v1645_v26 = vpop.f32.mrb[8].mxu0  ;;  %v1673_v27 = vpop.f32.mrb[8].mxu1 }
 0x1d2   :  { %v700_v28 = vmul.f32 %v1645_v26, %v1431_v23  ;;  %v708_v30 = vmul.f32 %v1673_v27, %v1431_v23  ;;  %v522_v29 = vpop.f32.mrb[9].mxu0  ;;  %v651_v31 = vpop.f32.mrb[9].mxu1 }
 0x1d3   :  { %v699_v32 = vmul.f32 %v1430_v24, %v522_v29  ;;  %v707_v25 = vmul.f32 %v1430_v24, %v651_v31 }
 0x1d5   :  { %v1825_v35 = vpack.c.bf16 %v700_v28, %v699_v32  ;;  %v1841_v36 = vpack.c.bf16 %v708_v30, %v707_v25  ;;  %v1648_v37 = vpop.f32.mrb[10].mxu0  ;;  %v1676_v39 = vpop.f32.mrb[10].mxu1 }
 0x1d6   :  { %v702_v40 = vmul.f32 %v1648_v37, %v1433_v33  ;;  %v710_v42 = vmul.f32 %v1676_v39, %v1433_v33  ;;  %v532_v57 = vpop.f32.mrb[11].mxu0  ;;  %v661_v60 = vpop.f32.mrb[11].mxu1  ;;  %v1457_v39 = vld [vmem:[%s2480_s3 + $0x1] ss:$0 sm:$0xff] }
 0x1d7   :  { %v701_v61 = vmul.f32 %v1432_v34, %v532_v57  ;;  %v709_v63 = vmul.f32 %v1432_v34, %v661_v60  ;;  %1826 = vmatprep.subr.bf16.mxu0 %v1825_v35  ;;  %1842 = vmatprep.subr.bf16.mxu1 %v1841_v36  ;;  %v1456_v60 = vld [vmem:[%s2480_s3] ss:$0 sm:$0xff] }
 0x1d8   :  { %1828 = vmatpush3.bf16.msra.mxu0 %v1825_v35  ;;  %1844 = vmatpush3.bf16.msra.mxu1 %v1841_v36 }
 0x1d9   :  { %v1829_v4 = vpack.c.bf16 %v702_v40, %v701_v61  ;;  %v1845_v5 = vpack.c.bf16 %v710_v42, %v709_v63  ;;  %v1651_v6 = vpop.f32.mrb[12].mxu0  ;;  %v1679_v7 = vpop.f32.mrb[12].mxu1 }
 0x1da   :  { %v704_v8 = vmul.f32 %v1651_v6, %v1435_v0  ;;  %v712_v9 = vmul.f32 %v1679_v7, %v1435_v0  ;;  %v542_v10 = vpop.f32.mrb[13].mxu0  ;;  %v671_v11 = vpop.f32.mrb[13].mxu1 }
 0x1db   :  { %v703_v12 = vmul.f32 %v1434_v1, %v542_v10  ;;  %v711_v15 = vmul.f32 %v1434_v1, %v671_v11  ;;  %1830 = vmatprep.subr.bf16.mxu0 %v1829_v4  ;;  %1846 = vmatprep.subr.bf16.mxu1 %v1845_v5 }
 0x1dc   :  { %1832 = vmatpush3.bf16.msra.mxu0 %v1829_v4  ;;  %1848 = vmatpush3.bf16.msra.mxu1 %v1845_v5 }
 0x1dd   :  { %v1833_v18 = vpack.c.bf16 %v704_v8, %v703_v12  ;;  %v1849_v19 = vpack.c.bf16 %v712_v9, %v711_v15  ;;  %v1682_v20 = vpop.f32.mrb[14].mxu1 }
 0x1de   :  { %v1654_v21 = vpop.f32.mrb[14].mxu0  ;;  %v714_v22 = vmul.f32 %v1682_v20, %v1437_v16  ;;  %v681_v23 = vpop.f32.mrb[15].mxu1 }
 0x1df   :  { %v706_v24 = vmul.f32 %v1654_v21, %v1437_v16  ;;  %v552_v26 = vpop.f32.mrb[15].mxu0  ;;  %v713_v27 = vmul.f32 %v1436_v17, %v681_v23  ;;  %1834 = vmatprep.subr.bf16.mxu0 %v1833_v18  ;;  %1850 = vmatprep.subr.bf16.mxu1 %v1849_v19 }
 0x1e0   :  { %v705_v28 = vmul.f32 %v1436_v17, %v552_v26  ;;  %1836 = vmatpush3.bf16.msra.mxu0 %v1833_v18  ;;  %1852 = vmatpush3.bf16.msra.mxu1 %v1849_v19 }
 0x1e1   :  { %v1853_v30 = vpack.c.bf16 %v714_v22, %v713_v27 }
 0x1e2   :  { %v1837_v29 = vpack.c.bf16 %v706_v24, %v705_v28 }
 0x1e3   :  { %1854 = vmatprep.subr.bf16.mxu1 %v1853_v30 }
 0x1e4   :  { %1838 = vmatprep.subr.bf16.mxu0 %v1837_v29  ;;  %1856 = vmatpush3.bf16.msra.mxu1 %v1853_v30 }
 0x1e5   :  { %1840 = vmatpush3.bf16.msra.mxu0 %v1837_v29 }
 0x1e7   :  { %1728 = vmatmul.mubr.msk.f32.vlgmr.msra.gmra.mrb[16].mxu1 %vm96_vm0, %v2076_v44 }
 0x1e8   :  { %1700 = vmatmul.mubr.msk.f32.vlgmr.msra.gmra.mrb[16].mxu0 %vm96_vm0, %v2071_v43  ;;  %1730 = vmatprep.mubr.msk.f32.mxu1 %vm96_vm0, %v2086_v46  ;;  %v1455_v43 = vld [vmem:[%s2477_s4 + $0x88] ss:$0 sm:$0xff] }
 0x1e9   :  { %1702 = vmatprep.mubr.msk.f32.mxu0 %vm96_vm0, %v2081_v45 }
 0x1ef   :  { %1731 = vmatmul.mubr.msk.f32.gmra.mrb[16].mxu1 %vm96_vm0, %v2104_v48 }
 0x1f0   :  { %1703 = vmatmul.mubr.msk.f32.gmra.mrb[16].mxu0 %vm96_vm0, %v2099_v47  ;;  %1733 = vmatprep.mubr.msk.f32.mxu1 %vm96_vm0, %v2114_v50 }
 0x1f1   :  { %1705 = vmatprep.mubr.msk.f32.mxu0 %vm96_vm0, %v2109_v49 }
 0x1f7   :  { %1734 = vmatmul.mubr.msk.f32.gmra.mrb[16].mxu1 %vm96_vm0, %v2132_v52 }
 0x1f8   :  { %1706 = vmatmul.mubr.msk.f32.gmra.mrb[16].mxu0 %vm96_vm0, %v2127_v51  ;;  %1736 = vmatprep.mubr.msk.f32.mxu1 %vm96_vm0, %v2142_v54 }
 0x1f9   :  { %1708 = vmatprep.mubr.msk.f32.mxu0 %vm96_vm0, %v2137_v53 }
 0x1ff   :  { %1737 = vmatmul.mubr.msk.f32.gmra.mrb[16].mxu1 %vm96_vm0, %v2160_v56 }
 0x200   :  { %1709 = vmatmul.mubr.msk.f32.gmra.mrb[16].mxu0 %vm96_vm0, %v2155_v55 }
 0x2d2   :  { %v1738_v44 = vpop.f32.mrb[16].mxu1 }
 0x2d3   :  { %v1710_v45 = vpop.f32.mrb[16].mxu0  ;;  %v916_v46 = vpop.f32.mrb[17].mxu1  ;;  %v945_v48 = vmul.f32 %v1738_v44, %v1455_v43 }
 0x2d4   :  { %v943_v47 = vmul.f32 %v1710_v45, %v1455_v43  ;;  %v811_v49 = vpop.f32.mrb[17].mxu0  ;;  %v944_v50 = vmul.f32 %v1455_v43, %v916_v46 }
 0x2d5   :  { %v942_v51 = vmul.f32 %v1455_v43, %v811_v49  ;;  %v949_v55 = vmul.f32 %v945_v48, %v2181_v38 }
 0x2d6   :  { %v948_v52 = vmul.f32 %v944_v50, %v2183_v41  ;;  %v947_v53 = vmul.f32 %v943_v47, %v2174_v13  ;;  %v416_v13 = vpop.permute.xlu1 %415 }
 0x2d7   :  { %v946_v54 = vmul.f32 %v942_v51, %v2176_v14  ;;  %v953_v25 = vadd.f32 1e-20, %v949_v55  ;;  %v426_v14 = vpop.permute.xlu0 %425  ;;  %v2329_v40 = vmul.f32 %v416_v13, %v2186_v58 }
 0x2d8   :  { %v952_v56 = vadd.f32 1e-20, %v948_v52  ;;  %v951_v32 = vadd.f32 1e-20, %v947_v53 }
 0x2d9   :  { %v950_v31 = vadd.f32 1e-20, %v946_v54  ;;  %v995_v63 = vmul.f32 %v1456_v60, %v2329_v40 }
 0x2da   :  { %v421_v38 = vpop.permute.xlu1 %420 }
 0x2db   :  { %1915 = vrcp.f32 %v950_v31  ;;  %v2323_v36 = vmul.f32 %v421_v38, %v2198_v62  ;;  %v411_v37 = vpop.permute.xlu0 %410  ;;  %v2339_v62 = vmul.f32 %v426_v14, %v2189_v59 }
 0x2dc   :  { %1917 = vrcp.f32 %v952_v56  ;;  %v2332_v42 = vmul.f32 %v411_v37, %v2208_v2  ;;  %v1002_v2 = vsel %vm998_vm1, %v995_v63, 0.0 }
 0x2dd   :  { %1919 = vrcp.f32 %v951_v32  ;;  %v996_v57 = vmul.f32 %v1457_v39, %v2323_v36  ;;  %v997_v1 = vmul.f32 %v1457_v39, %v2339_v62 }
 0x2de   :  { %1921 = vrcp.f32 %v953_v25  ;;  %v994_v58 = vmul.f32 %v1456_v60, %v2332_v42 }
 0x2df   :  { %v1005_v61 = vsel %vm998_vm1, %v996_v57, 0.0  ;;  %v1008_v4 = vsel %vm998_vm1, %v997_v1, 0.0 }
 0x2e0   :  { %v999_v0 = vsel %vm998_vm1, %v994_v58, 0.0 }
 0x2e5   :  { %v1916_v33 = vpop.eup %1915 }
 0x2e6   :  { %v1918_v34 = vpop.eup %1917  ;;  %960 = vperm.xlu1 %1899, %v1916_v33  }
 0x2e7   :  { %970 = vperm.xlu0 %1900, %v1918_v34   ;;  %v1920_v35 = vpop.eup %1919 }
 0x2e8   :  { %v1922_v41 = vpop.eup %1921 }
 0x2ea   :  { %965 = vperm.xlu1 %1899, %v1920_v35  }
 0x2eb   :  { %975 = vperm.xlu0 %1900, %v1922_v41  }
 0x2ee   :  { %1902 = vset.pattern.permute.xlu1 %v1955_v3 }
 0x2ef   :  { %1901 = vset.pattern.permute.xlu0 %v1955_v3 }
 0x30a   :  { %1006 = vadd.xlane.f32.xlu0 %v1005_v61 }
 0x30e   :  { %1003 = vadd.xlane.f32.xlu0 %v1002_v2  ;;  %1000 = vadd.xlane.f32.xlu1 %v999_v0 }
 0x312   :  { %1009 = vadd.xlane.f32.xlu1 %v1008_v4 }
 0x365   :  { %v961_v59 = vpop.permute.xlu1 %960 }
 0x366   :  { %v2348_v5 = vmul.f32 %v961_v59, %v946_v54  ;;  %v971_v6 = vpop.permute.xlu0 %970 }
 0x367   :  { %v2350_v7 = vmul.f32 %v971_v6, %v948_v52 }
 0x368   :  { %v1011_v8 = vmul.f32 %v1456_v60, %v2348_v5 }
 0x369   :  { %v966_v9 = vpop.permute.xlu1 %965  ;;  %v1013_v10 = vmul.f32 %v1457_v39, %v2350_v7 }
 0x36a   :  { %v2354_v11 = vmul.f32 %v966_v9, %v947_v53  ;;  %v976_v12 = vpop.permute.xlu0 %975  ;;  %v1015_v15 = vsel %vm998_vm1, %v1011_v8, 0.0 }
 0x36b   :  { %v2357_v16 = vmul.f32 %v976_v12, %v949_v55  ;;  %1016 = vadd.xlane.f32.xlu0 %v1015_v15  ;;  %v1021_v17 = vsel %vm998_vm1, %v1013_v10, 0.0  ;;  %v1957_v15 = vmov 1  }
 0x36c   :  { %1022 = vadd.xlane.f32.xlu1 %v1021_v17  ;;  %v1012_v18 = vmul.f32 %v1456_v60, %v2354_v11 }
 0x36d   :  { %v1014_v19 = vmul.f32 %v1457_v39, %v2357_v16 }
 0x36e   :  { %v1018_v20 = vsel %vm998_vm1, %v1012_v18, 0.0 }
 0x36f   :  { %1019 = vadd.xlane.f32.xlu0 %v1018_v20  ;;  %v1024_v21 = vsel %vm998_vm1, %v1014_v19, 0.0  ;;  %v1153_v20 = vld [vmem:[%s2481_s6] sm:$0xff] }
 0x370   :  { %1025 = vadd.xlane.f32.xlu1 %v1024_v21  ;;  %v1154_v21 = vld [vmem:[%s2481_s6 + $0x8] sm:$0xff] }
 0x397   :  { %v1007_v22 = vpop.xlane.xlu0 %1006 }
 0x39b   :  { %v1001_v23 = vpop.xlane.xlu1 %1000  ;;  %v1004_v24 = vpop.xlane.xlu0 %1003 }
 0x39f   :  { %v1010_v26 = vpop.xlane.xlu1 %1009 }
 0x3f8   :  { %v1017_v27 = vpop.xlane.xlu0 %1016 }
 0x3f9   :  { %v1023_v28 = vpop.xlane.xlu1 %1022  ;;  %v1028_v30 = vsel %vm1027_vm2, %v1001_v23, %v1017_v27  ;;  %v1857_v23 = vpack.c.bf16 %v1154_v21, %v1153_v20  ;;  %v1158_v27 = vld [vmem:[%s2481_s6 + $0x28] sm:$0xff] }
 0x3fa   :  { %v1030_v29 = vsel %vm1027_vm2, %v1007_v22, %v1023_v28  ;;  %v1032_v43 = vmul.f32 0.17677669, %v1028_v30  ;;  %v1155_v22 = vld [vmem:[%s2481_s6 + $0x10] sm:$0xff] }
 0x3fb   :  { %v1034_v44 = vmul.f32 0.17677669, %v1030_v29  ;;  %1858 = vmatprep.subr.bf16.mxu0 %v1857_v23  ;;  %1873 = vmatprep.subr.bf16.mxu1 %v1857_v23 }
 0x3fc   :  { %v1020_v45 = vpop.xlane.xlu0 %1019  ;;  %v1037_v46 = vsel %vm1036_vm3, %v1032_v43, -inf  ;;  %1860 = vmatpush3.bf16.msra.mxu0 %v1857_v23  ;;  %1877 = vmatpush3.bf16.msra.mxu1 %v1857_v23 }
 0x3fd   :  { %v1026_v47 = vpop.xlane.xlu1 %1025  ;;  %v1029_v48 = vsel %vm1027_vm2, %v1004_v24, %v1020_v45  ;;  %v1043_v49 = vsel %vm1036_vm3, %v1034_v44, -inf  ;;  %1038 = vmax.xlane.f32.xlu0 %v1037_v46  ;;  %v1160_v45 = vld [vmem:[%s2481_s6 + $0x38] sm:$0xff] }
 0x3fe   :  { %v1031_v50 = vsel %vm1027_vm2, %v1010_v26, %v1026_v47  ;;  %v1033_v51 = vmul.f32 0.17677669, %v1029_v48  ;;  %1044 = vmax.xlane.f32.xlu1 %v1043_v49  ;;  %v1157_v26 = vld [vmem:[%s2481_s6 + $0x20] sm:$0xff] }
 0x3ff   :  { %v1035_v52 = vmul.f32 0.17677669, %v1031_v50  ;;  %v1865_v28 = vpack.c.bf16 %v1158_v27, %v1157_v26 }
 0x400   :  { %v1040_v53 = vsel %vm1036_vm3, %v1033_v51, -inf }
 0x401   :  { %v1046_v54 = vsel %vm1036_vm3, %v1035_v52, -inf  ;;  %1041 = vmax.xlane.f32.xlu0 %v1040_v53 }
 0x402   :  { %1047 = vmax.xlane.f32.xlu1 %v1046_v54 }
 0x48a   :  { %v1039_v55 = vpop.xlane.xlu0 %1038 }
 0x48b   :  { %v1045_v56 = vpop.xlane.xlu1 %1044  ;;  %v1049_v31 = vsub.f32 %v1032_v43, %v1039_v55 }
 0x48c   :  { %v1051_v32 = vsub.f32 %v1034_v44, %v1045_v56  ;;  %v1159_v44 = vld [vmem:[%s2481_s6 + $0x30] sm:$0xff] }
 0x48d   :  { %v1053_v25 = vmul.f32 1.442695, %v1049_v31  ;;  %v1869_v46 = vpack.c.bf16 %v1160_v45, %v1159_v44 }
 0x48e   :  { %v1057_v33 = vmul.f32 1.442695, %v1051_v32  ;;  %v1042_v34 = vpop.xlane.xlu0 %1041 }
 0x48f   :  { %1923 = vpow2.f32 %v1053_v25  ;;  %v1048_v35 = vpop.xlane.xlu1 %1047  ;;  %v1050_v41 = vsub.f32 %v1033_v51, %v1042_v34 }
 0x490   :  { %1925 = vpow2.f32 %v1057_v33  ;;  %v1052_v13 = vsub.f32 %v1035_v52, %v1048_v35 }
 0x491   :  { %v1055_v14 = vmul.f32 1.442695, %v1050_v41 }
 0x492   :  { %v1059_v38 = vmul.f32 1.442695, %v1052_v13 }
 0x493   :  { %1927 = vpow2.f32 %v1055_v14  ;;  %v1132_v14 = vld [vmem:[%s2482_s5 + $0x18] sm:$0xff] }
 0x494   :  { %1929 = vpow2.f32 %v1059_v38 }
 0x499   :  { %v1924_v37 = vpop.eup %1923 }
 0x49a   :  { %v1926_v39 = vpop.eup %1925  ;;  %v1061_v57 = vsel %vm1036_vm3, %v1924_v37, 0.0 }
 0x49b   :  { %v1067_v60 = vsel %vm1036_vm3, %v1926_v39, 0.0  ;;  %1062 = vadd.xlane.f32.xlu0 %v1061_v57 }
 0x49c   :  { %1068 = vadd.xlane.f32.xlu1 %v1067_v60 }
 0x49d   :  { %v1928_v61 = vpop.eup %1927 }
 0x49e   :  { %v1930_v63 = vpop.eup %1929  ;;  %v1064_v58 = vsel %vm1036_vm3, %v1928_v61, 0.0 }
 0x49f   :  { %v1070_v2 = vsel %vm1036_vm3, %v1930_v63, 0.0  ;;  %1065 = vadd.xlane.f32.xlu0 %v1064_v58 }
 0x4a0   :  { %1071 = vadd.xlane.f32.xlu1 %v1070_v2 }
 0x528   :  { %v1063_v0 = vpop.xlane.xlu0 %1062 }
 0x529   :  { %v1069_v1 = vpop.xlane.xlu1 %1068  ;;  %1931 = vrcp.f32 %v1063_v0 }
 0x52c   :  { %v1066_v4 = vpop.xlane.xlu0 %1065 }
 0x52d   :  { %v1072_v59 = vpop.xlane.xlu1 %1071  ;;  %1933 = vrcp.f32 %v1066_v4 }
 0x52e   :  { %1935 = vrcp.f32 %v1072_v59 }
 0x52f   :  { %1937 = vrcp.f32 %v1069_v1 }
 0x533   :  { %v1932_v6 = vpop.eup %1931 }
 0x534   :  { %v1077_v8 = vmul.f32 %v1932_v6, %v1924_v37 }
 0x536   :  { %1083 = vperm.xlu0 %1901, %v1077_v8  }
 0x537   :  { %v1934_v9 = vpop.eup %1933 }
 0x538   :  { %v1078_v10 = vmul.f32 %v1934_v9, %v1928_v61  ;;  %v1936_v12 = vpop.eup %1935 }
 0x539   :  { %v1080_v17 = vmul.f32 %v1936_v12, %v1930_v63  ;;  %v1938_v18 = vpop.eup %1937 }
 0x53a   :  { %1088 = vperm.xlu1 %1902, %v1078_v10   ;;  %1906 = vset.pattern.permute.xlu0 %v1957_v15  ;;  %v1079_v19 = vmul.f32 %v1938_v18, %v1926_v39  ;;  %v1458_v39 = vld [vmem:[%s2483_s7] ss:$0 sm:$0xff] }
 0x53e   :  { %1098 = vperm.xlu1 %1902, %v1080_v17  }
 0x542   :  { %1903 = vset.pattern.permute.xlu1 %v1957_v15 }
 0x543   :  { %1110 = vperm.xlu1 %1903, %v1078_v10  }
 0x547   :  { %1904 = vset.pattern.permute.xlu1 %v1955_v3  ;;  %v1156_v3 = vld [vmem:[%s2481_s6 + $0x18] sm:$0xff]  ;;  %s1958_s6 = smov 32  }
 0x548   :  { %1093 = vperm.xlu1 %1904, %v1079_v19   ;;  %v1861_v24 = vpack.c.bf16 %v1156_v3, %v1155_v22 }
 0x54a   :  { %1862 = vmatprep.subr.bf16.mxu0 %v1861_v24  ;;  %1874 = vmatprep.subr.bf16.mxu1 %v1861_v24 }
 0x54b   :  { %1864 = vmatpush3.bf16.msra.mxu0 %v1861_v24  ;;  %1878 = vmatpush3.bf16.msra.mxu1 %v1861_v24 }
 0x54c   :  { %1905 = vset.pattern.permute.xlu1 %v1957_v15  ;;  %1866 = vmatprep.subr.bf16.mxu0 %v1865_v28 }
 0x54d   :  { %1106 = vperm.xlu1 %1905, %v1077_v8   ;;  %1875 = vmatprep.subr.bf16.mxu1 %v1865_v28 }
 0x54f   :  { %1868 = vmatpush3.bf16.msra.mxu0 %v1865_v28  ;;  %1879 = vmatpush3.bf16.msra.mxu1 %v1865_v28 }
 0x550   :  { %1870 = vmatprep.subr.bf16.mxu0 %v1869_v46  ;;  %1876 = vmatprep.subr.bf16.mxu1 %v1869_v46 }
 0x551   :  { %1114 = vperm.xlu1 %1905, %v1079_v19  }
 0x553   :  { %1872 = vmatpush3.bf16.msra.mxu0 %v1869_v46  ;;  %1880 = vmatpush3.bf16.msra.mxu1 %v1869_v46 }
 0x555   :  { %1118 = vperm.xlu1 %1905, %v1080_v17  }
 0x5b5   :  { %v1084_v48 = vpop.permute.xlu0 %1083 }
 0x5b6   :  { %v1101_v50 = vmul.f32 %v1084_v48, %v2332_v42 }
 0x5b9   :  { %v1089_v30 = vpop.permute.xlu1 %1088 }
 0x5ba   :  { %v1102_v55 = vmul.f32 %v1089_v30, %v2329_v40  ;;  %v1129_v40 = vld [vmem:[%s2482_s5] sm:$0xff] }
 0x5bd   :  { %v1099_v29 = vpop.permute.xlu1 %1098 }
 0x5be   :  { %v1104_v34 = vmul.f32 %v1099_v29, %v2339_v62  ;;  %v1131_v62 = vld [vmem:[%s2482_s5 + $0x10] sm:$0xff] }
 0x5c2   :  { %v1111_v43 = vpop.permute.xlu1 %1110 }
 0x5c3   :  { %v1122_v52 = vmul.f32 %v1111_v43, %v2354_v11  ;;  %v1130_v11 = vld [vmem:[%s2482_s5 + $0x8] sm:$0xff] }
 0x5c5   :  { %v1126_v32 = vadd.f32 %v1122_v52, %v1102_v55 }
 0x5c7   :  { %v1094_v47 = vpop.permute.xlu1 %1093 }
 0x5c8   :  { %v1103_v56 = vmul.f32 %v1094_v47, %v2323_v36 }
 0x5cc   :  { %v1107_v49 = vpop.permute.xlu1 %1106 }
 0x5cd   :  { %v1121_v51 = vmul.f32 %v1107_v49, %v2348_v5 }
 0x5cf   :  { %v1125_v53 = vadd.f32 %v1121_v51, %v1101_v50 }
 0x5d0   :  { %v1115_v54 = vpop.permute.xlu1 %1114 }
 0x5d1   :  { %v1123_v31 = vmul.f32 %v1115_v54, %v2350_v7  ;;  %1137 = vrot.lane.b32.xlu1 %v1125_v53, %s1958_s6 }
 0x5d3   :  { %v1127_v25 = vadd.f32 %v1123_v31, %v1103_v56 }
 0x5d4   :  { %v1119_v33 = vpop.permute.xlu1 %1118 }
 0x5d5   :  { %v1124_v42 = vmul.f32 %v1119_v33, %v2357_v16  ;;  %1141 = vrot.lane.b32.xlu0 %v1127_v25, %s1958_s6  ;;  %1139 = vrot.lane.b32.xlu1 %v1126_v32, %s1958_s6 }
 0x5d7   :  { %v1128_v5 = vadd.f32 %v1124_v42, %v1104_v34 }
 0x5d9   :  { %1143 = vrot.lane.b32.xlu0 %v1128_v5, %s1958_s6 }
 0x643   :  { %v1138_v36 = vpop.permute.xlu1 %1137 }
 0x644   :  { %v1149_v7 = vsel %vm998_vm1, %v1129_v40, %v1138_v36 }
 0x645   :  { %1755 = vmatprep.mubr.msk.f32.mxu0 %vm96_vm0, %v1149_v7 }
 0x647   :  { %v1140_v16 = vpop.permute.xlu1 %1139  ;;  %v1142_v35 = vpop.permute.xlu0 %1141 }
 0x648   :  { %v1150_v41 = vsel %vm998_vm1, %v1130_v11, %v1140_v16  ;;  %v1151_v13 = vsel %vm998_vm1, %v1131_v62, %v1142_v35 }
 0x649   :  { %1756 = vmatmul.mubr.msk.f32.vlgmr.msra.gmra.mrb[18].mxu0 %vm96_vm0, %v1150_v41  ;;  %1758 = vmatprep.mubr.msk.f32.mxu1 %vm96_vm0, %v1151_v13 }
 0x64b   :  { %v1144_v38 = vpop.permute.xlu0 %1143 }
 0x64c   :  { %v1152_v37 = vsel %vm998_vm1, %v1132_v14, %v1144_v38 }
 0x64d   :  { %1759 = vmatmul.mubr.msk.f32.vlgmr.msra.gmra.mrb[18].mxu1 %vm96_vm0, %v1152_v37 }
 0x71c   :  { %v1757_v57 = vpop.f32.mrb[18].mxu0 }
 0x71d   :  { %v2428_v60 = vadd.f32 %v1757_v57, %v1458_v39  ;;  %v1246_v61 = vpop.f32.mrb[19].mxu0 }
 0x71e   :  { %v2430_v63 = vadd.f32 %v1458_v39, %v1246_v61 }
 0x71f   :  { %v2433_v58 = vmul.f32 0.70710677, %v2428_v60 }
 0x720   :  { %v2436_v2 = vmul.f32 0.70710677, %v2430_v63  ;;  %v1760_v0 = vpop.f32.mrb[18].mxu1 }
 0x721   :  { %v1274_v1 = vand.u32 2147483647, %v2433_v58  ;;  %v2439_v4 = vadd.f32 %v1760_v0, %v1458_v39  ;;  %v1256_v59 = vpop.f32.mrb[19].mxu1  ;;  %vm1354_vm4 = vcmp.lt.f32.partialorder %v2433_v58, 0.0 }
 0x722   :  { %v1273_v6 = vand.u32 2147483647, %v2436_v2  ;;  %v2442_v8 = vadd.f32 %v1458_v39, %v1256_v59  ;;  %vm1353_vm5 = vcmp.lt.f32.partialorder %v2436_v2, 0.0 }
 0x723   :  { %v1278_v9 = vmul.f32 0.3275911, %v1274_v1  ;;  %v2445_v10 = vmul.f32 0.70710677, %v2439_v4  ;;  %v1330_v24 = vsub.f32 0.0, %v1274_v1 }
 0x724   :  { %v1277_v12 = vmul.f32 0.3275911, %v1273_v6  ;;  %v2448_v15 = vmul.f32 0.70710677, %v2442_v8  ;;  %v1329_v26 = vsub.f32 0.0, %v1273_v6 }
 0x725   :  { %v1282_v17 = vadd.f32 1.0, %v1278_v9  ;;  %v1276_v18 = vand.u32 2147483647, %v2445_v10  ;;  %v1334_v28 = vmul.f32 %v1330_v24, %v1274_v1  ;;  %vm1356_vm6 = vcmp.lt.f32.partialorder %v2445_v10, 0.0 }
 0x726   :  { %v1281_v19 = vadd.f32 1.0, %v1277_v12  ;;  %v1275_v20 = vand.u32 2147483647, %v2448_v15  ;;  %v1333_v44 = vmul.f32 %v1329_v26, %v1273_v6  ;;  %vm1355_vm7 = vcmp.lt.f32.partialorder %v2448_v15, 0.0 }
 0x727   :  { %1939 = vrcp.f32 %v1282_v17  ;;  %v1280_v21 = vmul.f32 0.3275911, %v1276_v18  ;;  %v1332_v30 = vsub.f32 0.0, %v1276_v18  ;;  %v1339_v49 = vmul.f32 1.442695, %v1334_v28 }
 0x728   :  { %1941 = vrcp.f32 %v1281_v19  ;;  %v1279_v22 = vmul.f32 0.3275911, %v1275_v20  ;;  %v1331_v45 = vsub.f32 0.0, %v1275_v20  ;;  %v1337_v54 = vmul.f32 1.442695, %v1333_v44 }
 0x729   :  { %v1284_v23 = vadd.f32 1.0, %v1280_v21  ;;  %v1336_v51 = vmul.f32 %v1332_v30, %v1276_v18 }
 0x72a   :  { %v1283_v3 = vadd.f32 1.0, %v1279_v22  ;;  %v1335_v56 = vmul.f32 %v1331_v45, %v1275_v20 }
 0x72b   :  { %1943 = vrcp.f32 %v1284_v23  ;;  %v1343_v42 = vmul.f32 1.442695, %v1336_v51 }
 0x72c   :  { %1945 = vrcp.f32 %v1283_v3  ;;  %v1341_v7 = vmul.f32 1.442695, %v1335_v56 }
 0x72d   :  { %1947 = vpow2.f32 %v1339_v49 }
 0x72e   :  { %1949 = vpow2.f32 %v1337_v54 }
 0x72f   :  { %1951 = vpow2.f32 %v1343_v42 }
 0x730   :  { %1953 = vpow2.f32 %v1341_v7 }
 0x731   :  { %v1940_v27 = vpop.eup %1939 }
 0x732   :  { %v1942_v29 = vpop.eup %1941  ;;  %v1294_v43 = vmul.f32 1.0614054, %v1940_v27 }
 0x733   :  { %v1293_v46 = vmul.f32 1.0614054, %v1942_v29 }
 0x734   :  { %v1298_v47 = vadd.f32 -1.4531521, %v1294_v43 }
 0x735   :  { %v1944_v48 = vpop.eup %1943  ;;  %v1297_v50 = vadd.f32 -1.4531521, %v1293_v46 }
 0x736   :  { %v1946_v52 = vpop.eup %1945  ;;  %v1302_v53 = vmul.f32 %v1940_v27, %v1298_v47  ;;  %v1296_v55 = vmul.f32 1.0614054, %v1944_v48  ;;  %v1266_v47 = vmul.f32 0.5, %v2428_v60  ;;  %v1268_v60 = vmul.f32 0.5, %v2439_v4 }
 0x737   :  { %v1301_v31 = vmul.f32 %v1942_v29, %v1297_v50  ;;  %v1295_v32 = vmul.f32 1.0614054, %v1946_v52  ;;  %v1948_v9 = vpop.eup %1947 }
 0x738   :  { %v1306_v25 = vadd.f32 1.4214138, %v1302_v53  ;;  %v1300_v33 = vadd.f32 -1.4531521, %v1296_v55  ;;  %v1950_v18 = vpop.eup %1949 }
 0x739   :  { %v1305_v34 = vadd.f32 1.4214138, %v1301_v31  ;;  %v1299_v5 = vadd.f32 -1.4531521, %v1295_v32  ;;  %v1952_v24 = vpop.eup %1951 }
 0x73a   :  { %v1310_v40 = vmul.f32 %v1940_v27, %v1306_v25  ;;  %v1304_v36 = vmul.f32 %v1944_v48, %v1300_v33  ;;  %v1954_v30 = vpop.eup %1953 }
 0x73b   :  { %v1309_v11 = vmul.f32 %v1942_v29, %v1305_v34  ;;  %v1303_v62 = vmul.f32 %v1946_v52, %v1299_v5 }
 0x73c   :  { %v1314_v16 = vadd.f32 -0.28449672, %v1310_v40  ;;  %v1308_v35 = vadd.f32 1.4214138, %v1304_v36 }
 0x73d   :  { %v1313_v41 = vadd.f32 -0.28449672, %v1309_v11  ;;  %v1307_v13 = vadd.f32 1.4214138, %v1303_v62 }
 0x73e   :  { %v1318_v14 = vmul.f32 %v1940_v27, %v1314_v16  ;;  %v1312_v38 = vmul.f32 %v1944_v48, %v1308_v35 }
 0x73f   :  { %v1317_v37 = vmul.f32 %v1942_v29, %v1313_v41  ;;  %v1311_v39 = vmul.f32 %v1946_v52, %v1307_v13 }
 0x740   :  { %v1322_v57 = vadd.f32 0.2548296, %v1318_v14  ;;  %v1316_v61 = vadd.f32 -0.28449672, %v1312_v38 }
 0x741   :  { %v1321_v0 = vadd.f32 0.2548296, %v1317_v37  ;;  %v1315_v1 = vadd.f32 -0.28449672, %v1311_v39 }
 0x742   :  { %v1326_v59 = vmul.f32 %v1940_v27, %v1322_v57  ;;  %v1320_v6 = vmul.f32 %v1944_v48, %v1316_v61 }
 0x743   :  { %v1325_v12 = vmul.f32 %v1942_v29, %v1321_v0  ;;  %v1319_v17 = vmul.f32 %v1946_v52, %v1315_v1 }
 0x744   :  { %v1346_v19 = vmul.f32 %v1948_v9, %v1326_v59  ;;  %v1324_v20 = vadd.f32 0.2548296, %v1320_v6 }
 0x745   :  { %v1345_v21 = vmul.f32 %v1950_v18, %v1325_v12  ;;  %v1323_v22 = vadd.f32 0.2548296, %v1319_v17 }
 0x746   :  { %v1350_v23 = vsub.f32 1.0, %v1346_v19  ;;  %v1328_v3 = vmul.f32 %v1944_v48, %v1324_v20  ;;  %v1265_v48 = vmul.f32 0.5, %v2430_v63  ;;  %v1267_v63 = vmul.f32 0.5, %v2442_v8 }
 0x747   :  { %v1349_v26 = vsub.f32 1.0, %v1345_v21  ;;  %v1327_v28 = vmul.f32 %v1946_v52, %v1323_v22 }
 0x748   :  { %v1358_v43 = vsub.f32 0.0, %v1350_v23  ;;  %v1348_v44 = vmul.f32 %v1952_v24, %v1328_v3 }
 0x749   :  { %v1357_v27 = vsub.f32 0.0, %v1349_v26  ;;  %v1347_v45 = vmul.f32 %v1954_v30, %v1327_v28 }
 0x74a   :  { %v1362_v46 = vsel %vm1354_vm4, %v1358_v43, %v1350_v23  ;;  %v1352_v29 = vsub.f32 1.0, %v1348_v44 }
 0x74b   :  { %v1366_v49 = vadd.f32 1.0, %v1362_v46  ;;  %v1361_v50 = vsel %vm1353_vm5, %v1357_v27, %v1349_v26  ;;  %v1351_v51 = vsub.f32 1.0, %v1347_v45 }
 0x74c   :  { %v1365_v53 = vadd.f32 1.0, %v1361_v50  ;;  %v1360_v52 = vsub.f32 0.0, %v1352_v29 }
 0x74d   :  { %v1370_v54 = vmul.f32 %v1366_v49, %v1266_v47  ;;  %v1359_v55 = vsub.f32 0.0, %v1351_v51 }
 0x74e   :  { %v1369_v58 = vmul.f32 %v1365_v53, %v1265_v48  ;;  %v1364_v56 = vsel %vm1356_vm6, %v1360_v52, %v1352_v29 }
 0x74f   :  { %1374 = vst.msk [vmem:[%s2484_s8 + $0x8] sm:$0xff] %vm998_vm1, %v1370_v54  ;;  %v1368_v2 = vadd.f32 1.0, %v1364_v56  ;;  %v1363_v31 = vsel %vm1355_vm7, %v1359_v55, %v1351_v51 }
 0x750   :  { %1373 = vst.msk [vmem:[%s2484_s8] sm:$0xff] %vm998_vm1, %v1369_v58  ;;  %v1367_v10 = vadd.f32 1.0, %v1363_v31 }
 0x751   :  { %v1372_v32 = vmul.f32 %v1368_v2, %v1268_v60 }
 0x752   :  { %v1371_v25 = vmul.f32 %v1367_v10, %v1267_v63 }
 0x753   :  { %1376 = vst.msk [vmem:[%s2484_s8 + $0x18] sm:$0xff] %vm998_vm1, %v1372_v32 }
 0x754   :  { %1375 = vst.msk [vmem:[%s2484_s8 + $0x10] sm:$0xff] %vm998_vm1, %v1371_v25 }

</bundles_post_ra>
